<compile_context>
chip_gen: v6e
topology: v6e:2x2x1
jax: 0.10.0
libtpu: 0.0.40
codegen_flags: <defaults>
</compile_context>

<pallas_src>
import functools

import jax
import jax.numpy as jnp
from jax.experimental import pallas as pl
from jax.experimental.pallas import tpu as pltpu

# ---------------- synthetic config ----------------
B = 2          # batch
S = 8          # encoder sequence length
E = 32         # embedding_size
HE = 32        # en_hidden_size
H = 32         # de_hidden_size (== E so attn_combine output feeds the LSTM)
V = 32         # tgt_vocab_size
L = 1          # de_num_layers
PAD_IDX = 0

LANE = 128

# ---- fused hidden projection block: h_prev @ [attn_Wh | out_W | pad | w_hh] ----
# 256 columns -> single MXU pass on v6e/v7x; attention-critical attn_Wh and the
# deferred out_W occupy the first 128-wide result tile (v5e drains 128-wide).
COL_ATTN_H = 0                  # [0,   H)    attn_Wh
COL_OUT    = H                  # [H,  H+V)   out_W  (deferred output projection)
COL_W_HH   = LANE               # [128, 256)  w_hh
W_FUSED    = 2 * LANE           # 256

# ---- remaining 32-row weight matrices, each starting on a 128-lane tile ----
W_IH_C   = W_FUSED              # [256, 384)  w_ih
W_ATTN_E = W_IH_C + 4 * H       # [384, 416)  attn_We
W_COMB_C = W_ATTN_E + LANE      # [512, 544)  comb_Wc
W32_COLS = W_COMB_C + LANE      # 640

# ---- packed bias slab [1, 256] ----
B_LSTM   = 0                    # b_ih + b_hh  [1, 4H]
B_ATTN_B = 4 * H                # attn_b       [1, H]
B_ATTN_V = B_ATTN_B + H         # attn_v       [1, H]
B_COMB_B = B_ATTN_V + H         # comb_b       [1, H]
B_OUT_B  = B_COMB_B + H         # out_b        [1, V]
BIAS_COLS = 2 * LANE            # 256


def _decoder_kernel(T, xp_ref, enc_ref, h0_ref, c0_ref, lens_ref, w32_ref, bias_ref,
                    logp_ref, state_ref):
    """Fused T-step teacher-forced decode; everything VMEM-resident, no grid loop."""
    # ---------------- once-per-call setup (hoisted out of the T loop) -------
    enc = enc_ref[...]                                          # [B, S, HE]
    attn_we = w32_ref[:, W_ATTN_E:W_ATTN_E + H]                 # [HE, H]
    ewe = jnp.dot(enc.reshape(B * S, HE), attn_we,
                  preferred_element_type=jnp.float32).reshape(B, S, H)

    fused_w = w32_ref[:, 0:W_FUSED]                             # [H, 256]
    w_ih    = w32_ref[:, W_IH_C:W_IH_C + 4 * H]                 # [H, 4H]
    comb_wc = w32_ref[:, W_COMB_C:W_COMB_C + H]                 # [HE, H]
    out_w   = w32_ref[:, COL_OUT:COL_OUT + V]                   # [H, V]

    b_lstm = bias_ref[:, B_LSTM:B_LSTM + 4 * H]                 # [1, 4H]
    attn_b = bias_ref[:, B_ATTN_B:B_ATTN_B + H].reshape(1, 1, H)
    attn_v = bias_ref[:, B_ATTN_V:B_ATTN_V + H].reshape(1, 1, H)
    comb_b = bias_ref[:, B_COMB_B:B_COMB_B + H]                 # [1, H]
    out_b  = bias_ref[:, B_OUT_B:B_OUT_B + V]                   # [1, V]

    # additive attention mask (0 valid / -1e30 pad), built once from src_lens
    pos = jax.lax.broadcasted_iota(jnp.int32, (B, S), 1)
    neg_mask = jnp.where(pos < lens_ref[...], 0.0, -1e30).astype(jnp.float32)

    # single-tanh gate activation constants: sigmoid(x) = 0.5*(tanh(x/2)+1)
    lane = jax.lax.broadcasted_iota(jnp.int32, (1, 4 * H), 1)
    is_tanh_lane = (lane >= 2 * H) & (lane < 3 * H)             # 'g' gate lanes
    pre_scale = jnp.where(is_tanh_lane, 1.0, 0.5)               # [1, 4H]

    h = h0_ref[0]                                               # [B, H]
    c = c0_ref[0]                                               # [B, H]

    def write_logp(t_idx, logits):
        z = logits - jnp.max(logits, axis=-1, keepdims=True)
        logp_ref[t_idx] = z - jnp.log(jnp.sum(jnp.exp(z), axis=-1, keepdims=True))

    # ---------------- fully-unrolled T-step recurrence ----------------------
    # T is a trace-time constant; the Python `for` is a full unroll so step t's
    # deferred log-softmax overlaps step t+1's attention head.
    for t in range(T):
        # fused projection of the carried hidden state: one MXU issue yields
        # h_wh (attention), the previous step's logits (deferred out_W) and
        # the recurrent gate contribution (w_hh).
        h_proj = jnp.dot(h, fused_w, preferred_element_type=jnp.float32)   # [B, 256]
        h_wh = h_proj[:, COL_ATTN_H:COL_ATTN_H + H]                        # [B, H]
        if t >= 1:
            write_logp(t - 1, h_proj[:, COL_OUT:COL_OUT + V] + out_b)
        gates_h = h_proj[:, COL_W_HH:COL_W_HH + 4 * H]                     # [B, 4H]

        # masked additive (Bahdanau) attention over encoder outputs
        energy = jnp.tanh(ewe + h_wh[:, None, :] + attn_b)                 # [B, S, H]
        scores = jnp.sum(energy * attn_v, axis=-1) + neg_mask              # [B, S]
        scores = scores - jnp.max(scores, axis=-1, keepdims=True)
        ex = jnp.exp(scores)
        attn_w = ex * pl.reciprocal(jnp.sum(ex, axis=-1, keepdims=True), approx=True)
        context = jnp.sum(attn_w[:, :, None] * enc, axis=1)                # [B, HE]

        # attn_combine (comb_Wx pre-folded into the embedding gather) + relu
        y = jnp.maximum(
            xp_ref[:, t, :]
            + jnp.dot(context, comb_wc, preferred_element_type=jnp.float32)
            + comb_b, 0.0)                                                 # [B, H]

        # one LSTM cell step (PyTorch gate order i, f, g, o), single-tanh EUP pass
        gates = (jnp.dot(y, w_ih, preferred_element_type=jnp.float32)
                 + gates_h + b_lstm)                                       # [B, 4H]
        tg = jnp.tanh(gates * pre_scale)
        act = jnp.where(is_tanh_lane, tg, 0.5 * tg + 0.5)
        i_g = act[:, 0:H]
        f_g = act[:, H:2 * H]
        g_g = act[:, 2 * H:3 * H]
        o_g = act[:, 3 * H:4 * H]
        c = f_g * c + i_g * g_g
        h = o_g * jnp.tanh(c)

    # trailing output projection for the final step + one-shot state writeback
    write_logp(T - 1, jnp.dot(h, out_w, preferred_element_type=jnp.float32) + out_b)
    state_ref[0] = h
    state_ref[1] = c


def pack_decoder_params(params):
    """One-time (init) packing of the 13 decoder tensors into 3 resident slabs.

    Hoisted out of the per-call jitted decode path per the perf review.
    """
    assert HE == H, "weight-slab packing assumes en_hidden_size == de_hidden_size"
    w32 = jnp.zeros((H, W32_COLS), jnp.float32)
    w32 = (w32.at[:, COL_ATTN_H:COL_ATTN_H + H].set(params["attn_Wh"])
              .at[:, COL_OUT:COL_OUT + V].set(params["out_W"])
              .at[:, COL_W_HH:COL_W_HH + 4 * H].set(params["w_hh"])
              .at[:, W_IH_C:W_IH_C + 4 * H].set(params["w_ih"])
              .at[:, W_ATTN_E:W_ATTN_E + H].set(params["attn_We"])
              .at[:, W_COMB_C:W_COMB_C + H].set(params["comb_Wc"]))
    bias = jnp.zeros((1, BIAS_COLS), jnp.float32)
    bias = (bias.at[:, B_LSTM:B_LSTM + 4 * H].set(params["b_lstm"])
                .at[:, B_ATTN_B:B_ATTN_B + H].set(params["attn_b"])
                .at[:, B_ATTN_V:B_ATTN_V + H].set(params["attn_v"])
                .at[:, B_COMB_B:B_COMB_B + H].set(params["comb_b"])
                .at[:, B_OUT_B:B_OUT_B + V].set(params["out_b"]))
    # Fold attn_combine's comb_Wx into the embedding table (exact algebraic hoist:
    # relu input is emb @ comb_Wx + context @ comb_Wc + comb_b).  PAD row stays 0.
    emb_comb = jnp.dot(params["embedding"], params["comb_Wx"])      # [vocab, H]
    return {"w32": w32, "bias": bias, "emb_comb": emb_comb}


@jax.jit
def att_bilstm_rnn_decoder(x_tok_seq, hidden, encoder_output, src_lens, packed):
    """Teacher-forced decode: applies the decoder forward once per token.

    x_tok_seq: [B, T] int32, hidden: (h0, c0) each [L, B, H], encoder_output:
    [B, S, HE], src_lens: [B].  Returns (logp [T, B, V], (h [L,B,H], c [L,B,H])).
    T == 1 reproduces the original single-step PyTorch forward.
    """
    h0, c0 = hidden
    T = x_tok_seq.shape[1]
    # Embedding lookup stays XLA glue (gather); comb_Wx is already folded in.
    x_proj = packed["emb_comb"][x_tok_seq]                       # [B, T, H]
    lens2d = src_lens.reshape(B, 1).astype(jnp.int32)

    logp, state = pl.pallas_call(
        functools.partial(_decoder_kernel, T),
        out_shape=(jax.ShapeDtypeStruct((T, B, V), jnp.float32),
                   jax.ShapeDtypeStruct((2, B, H), jnp.float32)),
        grid=(1,),
        in_specs=[
            pl.BlockSpec((B, T, H), lambda i: (0, 0, 0)),        # token projections
            pl.BlockSpec((B, S, HE), lambda i: (0, 0, 0)),       # encoder outputs
            pl.BlockSpec((L, B, H), lambda i: (0, 0, 0)),        # h0
            pl.BlockSpec((L, B, H), lambda i: (0, 0, 0)),        # c0
            pl.BlockSpec((B, 1), lambda i: (0, 0)),              # src_lens
            pl.BlockSpec((H, W32_COLS), lambda i: (0, 0)),       # packed weights
            pl.BlockSpec((1, BIAS_COLS), lambda i: (0, 0)),      # packed biases
        ],
        out_specs=(pl.BlockSpec((T, B, V), lambda i: (0, 0, 0)),
                   pl.BlockSpec((2, B, H), lambda i: (0, 0, 0))),
        compiler_params=pltpu.CompilerParams(dimension_semantics=("arbitrary",)),
    )(x_proj, encoder_output, h0, c0, lens2d, packed["w32"], packed["bias"])

    return logp, (state[0:1], state[1:2])


# ---------------- pure-JAX reference (same math, no Pallas) ----------------
def _reference(x_tok_seq, h0, c0, enc, src_lens, params):
    h, c = h0[0], c0[0]
    mask = jnp.arange(S)[None, :] < src_lens[:, None]
    outs = []
    for t in range(x_tok_seq.shape[1]):
        x_emb = params["embedding"][x_tok_seq[:, t]]
        h_wh = h @ params["attn_Wh"]
        e_we = (enc.reshape(B * S, HE) @ params["attn_We"]).reshape(B, S, H)
        energy = jnp.tanh(e_we + h_wh[:, None, :] + params["attn_b"].reshape(1, 1, H))
        scores = jnp.sum(energy * params["attn_v"].reshape(1, 1, H), axis=-1)
        scores = jnp.where(mask, scores, -1e30)
        attn_w = jax.nn.softmax(scores, axis=-1)
        context = jnp.sum(attn_w[:, :, None] * enc, axis=1)
        y = jax.nn.relu(x_emb @ params["comb_Wx"] + context @ params["comb_Wc"]
                        + params["comb_b"])
        gates = y @ params["w_ih"] + h @ params["w_hh"] + params["b_lstm"]
        i = jax.nn.sigmoid(gates[:, 0:H])
        f = jax.nn.sigmoid(gates[:, H:2 * H])
        g = jnp.tanh(gates[:, 2 * H:3 * H])
        o = jax.nn.sigmoid(gates[:, 3 * H:4 * H])
        c = f * c + i * g
        h = o * jnp.tanh(c)
        logits = h @ params["out_W"] + params["out_b"]
        outs.append(jax.nn.log_softmax(logits, axis=-1))
    return jnp.stack(outs, 0), h, c


def _init_params(key):
    ks = jax.random.split(key, 16)
    s = 0.1
    p = {
        "embedding": jax.random.normal(ks[0], (V, E), jnp.float32) * s,
        "attn_Wh":   jax.random.normal(ks[1], (H, H), jnp.float32) * s,
        "attn_We":   jax.random.normal(ks[2], (HE, H), jnp.float32) * s,
        "attn_b":    jax.random.normal(ks[3], (1, H), jnp.float32) * s,
        "attn_v":    jax.random.normal(ks[4], (1, H), jnp.float32) * s,
        "comb_Wx":   jax.random.normal(ks[5], (E, H), jnp.float32) * s,
        "comb_Wc":   jax.random.normal(ks[6], (HE, H), jnp.float32) * s,
        "comb_b":    jax.random.normal(ks[7], (1, H), jnp.float32) * s,
        "w_ih":      jax.random.normal(ks[8], (H, 4 * H), jnp.float32) * s,
        "w_hh":      jax.random.normal(ks[9], (H, 4 * H), jnp.float32) * s,
        "b_lstm":    jax.random.normal(ks[10], (1, 4 * H), jnp.float32) * s,
        "out_W":     jax.random.normal(ks[11], (H, V), jnp.float32) * s,
        "out_b":     jax.random.normal(ks[12], (1, V), jnp.float32) * s,
    }
    p["embedding"] = p["embedding"].at[PAD_IDX].set(0.0)   # padding_idx row
    return p


if __name__ == "__main__":
    key = jax.random.PRNGKey(0)
    kp, kh, kc, ke, kt = jax.random.split(key, 5)
    params = _init_params(kp)
    packed = pack_decoder_params(params)        # once at init (out of the hot path)

    T = 4
    x_tok_seq = jax.random.randint(kt, (B, T), 1, V).astype(jnp.int32)   # [B, T] ids
    h0 = jax.random.normal(kh, (L, B, H), jnp.float32) * 0.1
    c0 = jax.random.normal(kc, (L, B, H), jnp.float32) * 0.1
    encoder_output = jax.random.normal(ke, (B, S, HE), jnp.float32) * 0.1
    src_lens = jnp.array([8, 5], dtype=jnp.int32)

    logp_seq, (h, c) = att_bilstm_rnn_decoder(x_tok_seq, (h0, c0), encoder_output,
                                              src_lens, packed)
    jax.block_until_ready((logp_seq, h, c))
    assert logp_seq.shape == (T, B, V) and h.shape == (L, B, H) and c.shape == (L, B, H)

    ref_logp, ref_h, ref_c = _reference(x_tok_seq, h0, c0, encoder_output, src_lens, params)
    assert jnp.allclose(logp_seq, ref_logp, atol=2e-3, rtol=2e-3)
    assert jnp.allclose(h[0], ref_h, atol=2e-3, rtol=2e-3)
    assert jnp.allclose(c[0], ref_c, atol=2e-3, rtol=2e-3)
    print("KERNEL_OK")
</pallas_src>

<mosaic_0001>
module attributes {stable_mosaic.version = 11 : i64} {
  func.func @_decoder_kernel(%arg0: i32, %arg1: memref<2x4x32xf32, #tpu.memory_space<vmem>>, %arg2: memref<2x8x32xf32, #tpu.memory_space<vmem>>, %arg3: memref<1x2x32xf32, #tpu.memory_space<vmem>>, %arg4: memref<1x2x32xf32, #tpu.memory_space<vmem>>, %arg5: memref<2x1xi32, #tpu.memory_space<vmem>>, %arg6: memref<32x640xf32, #tpu.memory_space<vmem>>, %arg7: memref<1x256xf32, #tpu.memory_space<vmem>>, %arg8: memref<4x2x32xf32, #tpu.memory_space<vmem>>, %arg9: memref<2x2x32xf32, #tpu.memory_space<vmem>>) attributes {dimension_semantics = [#tpu.dimension_semantics<arbitrary>], iteration_bounds = array<i64: 1>, scalar_prefetch = 0 : i64, scratch_operands = 0 : i64, tpu.core_type = #tpu.core_type<tc>, window_params = [{pipeline_mode = #tpu.pipeline_mode<synchronous>, transform_indices = @transform_0, window_bounds = array<i64: 2, 4, 32>}, {pipeline_mode = #tpu.pipeline_mode<synchronous>, transform_indices = @transform_1, window_bounds = array<i64: 2, 8, 32>}, {pipeline_mode = #tpu.pipeline_mode<synchronous>, transform_indices = @transform_2, window_bounds = array<i64: 1, 2, 32>}, {pipeline_mode = #tpu.pipeline_mode<synchronous>, transform_indices = @transform_3, window_bounds = array<i64: 1, 2, 32>}, {pipeline_mode = #tpu.pipeline_mode<synchronous>, transform_indices = @transform_4, window_bounds = array<i64: 2, 1>}, {pipeline_mode = #tpu.pipeline_mode<synchronous>, transform_indices = @transform_5, window_bounds = array<i64: 32, 640>}, {pipeline_mode = #tpu.pipeline_mode<synchronous>, transform_indices = @transform_6, window_bounds = array<i64: 1, 256>}, {pipeline_mode = #tpu.pipeline_mode<synchronous>, transform_indices = @transform_7, window_bounds = array<i64: 4, 2, 32>}, {pipeline_mode = #tpu.pipeline_mode<synchronous>, transform_indices = @transform_8, window_bounds = array<i64: 2, 2, 32>}]} {
    %c0 = arith.constant 0 : index
    %c0_0 = arith.constant 0 : index
    %c0_1 = arith.constant 0 : index
    %0 = vector.load %arg2[%c0, %c0_0, %c0_1] : memref<2x8x32xf32, #tpu.memory_space<vmem>>, vector<2x8x32xf32>
    %c0_2 = arith.constant 0 : index
    %c384 = arith.constant 384 : index
    %1 = vector.load %arg6[%c0_2, %c384] : memref<32x640xf32, #tpu.memory_space<vmem>>, vector<32x32xf32>
    %2 = vector.shape_cast %0 : vector<2x8x32xf32> to vector<16x32xf32>
    %cst = arith.constant dense<0.000000e+00> : vector<16x32xf32>
    %3 = tpu.matmul %2, %1, %cst {dimension_numbers = #tpu.dot_dimension_numbers<[1], [0], [0], [1], [0, 0, 1, 1], [], []>} : vector<16x32xf32>, vector<32x32xf32>, vector<16x32xf32> -> vector<16x32xf32>
    %4 = vector.shape_cast %3 : vector<16x32xf32> to vector<2x8x32xf32>
    %c0_3 = arith.constant 0 : index
    %c0_4 = arith.constant 0 : index
    %5 = vector.load %arg6[%c0_3, %c0_4] : memref<32x640xf32, #tpu.memory_space<vmem>>, vector<32x256xf32>
    %c0_5 = arith.constant 0 : index
    %c256 = arith.constant 256 : index
    %6 = vector.load %arg6[%c0_5, %c256] : memref<32x640xf32, #tpu.memory_space<vmem>>, vector<32x128xf32>
    %c0_6 = arith.constant 0 : index
    %c512 = arith.constant 512 : index
    %7 = vector.load %arg6[%c0_6, %c512] : memref<32x640xf32, #tpu.memory_space<vmem>>, vector<32x32xf32>
    %c0_7 = arith.constant 0 : index
    %c32 = arith.constant 32 : index
    %8 = vector.load %arg6[%c0_7, %c32] : memref<32x640xf32, #tpu.memory_space<vmem>>, vector<32x32xf32>
    %c0_8 = arith.constant 0 : index
    %c0_9 = arith.constant 0 : index
    %9 = vector.load %arg7[%c0_8, %c0_9] : memref<1x256xf32, #tpu.memory_space<vmem>>, vector<1x128xf32>
    %c0_10 = arith.constant 0 : index
    %c128 = arith.constant 128 : index
    %10 = vector.load %arg7[%c0_10, %c128] : memref<1x256xf32, #tpu.memory_space<vmem>>, vector<1x32xf32>
    %11 = vector.shape_cast %10 : vector<1x32xf32> to vector<1x1x32xf32>
    %c0_11 = arith.constant 0 : index
    %c160 = arith.constant 160 : index
    %12 = vector.load %arg7[%c0_11, %c160] : memref<1x256xf32, #tpu.memory_space<vmem>>, vector<1x32xf32>
    %13 = vector.shape_cast %12 : vector<1x32xf32> to vector<1x1x32xf32>
    %c0_12 = arith.constant 0 : index
    %c192 = arith.constant 192 : index
    %14 = vector.load %arg7[%c0_12, %c192] : memref<1x256xf32, #tpu.memory_space<vmem>>, vector<1x32xf32>
    %c0_13 = arith.constant 0 : index
    %c224 = arith.constant 224 : index
    %15 = vector.load %arg7[%c0_13, %c224] : memref<1x256xf32, #tpu.memory_space<vmem>>, vector<1x32xf32>
    %16 = tpu.iota {dimensions = array<i32: 1>} : vector<2x8xi32>
    %c0_14 = arith.constant 0 : index
    %c0_15 = arith.constant 0 : index
    %17 = vector.load %arg5[%c0_14, %c0_15] : memref<2x1xi32, #tpu.memory_space<vmem>>, vector<2x1xi32>
    %18 = vector.broadcast %17 : vector<2x1xi32> to vector<2x8xi32>
    %19 = arith.cmpi slt, %16, %18 : vector<2x8xi32>
    %cst_16 = arith.constant 0.000000e+00 : f32
    %cst_17 = arith.constant -1.000000e+30 : f32
    %20 = vector.broadcast %cst_16 : f32 to vector<2x8xf32>
    %21 = vector.broadcast %cst_17 : f32 to vector<2x8xf32>
    %22 = arith.select %19, %20, %21 : vector<2x8xi1>, vector<2x8xf32>
    %23 = tpu.iota {dimensions = array<i32: 1>} : vector<1x128xi32>
    %c64_i32 = arith.constant 64 : i32
    %24 = vector.broadcast %c64_i32 : i32 to vector<1x128xi32>
    %25 = arith.cmpi sge, %23, %24 : vector<1x128xi32>
    %c96_i32 = arith.constant 96 : i32
    %26 = vector.broadcast %c96_i32 : i32 to vector<1x128xi32>
    %27 = arith.cmpi slt, %23, %26 : vector<1x128xi32>
    %28 = arith.andi %25, %27 : vector<1x128xi1>
    %cst_18 = arith.constant 1.000000e+00 : f32
    %cst_19 = arith.constant 5.000000e-01 : f32
    %29 = vector.broadcast %cst_18 : f32 to vector<1x128xf32>
    %30 = vector.broadcast %cst_19 : f32 to vector<1x128xf32>
    %31 = arith.select %28, %29, %30 : vector<1x128xi1>, vector<1x128xf32>
    %c0_20 = arith.constant 0 : index
    %c0_21 = arith.constant 0 : index
    %c0_22 = arith.constant 0 : index
    %32 = vector.load %arg3[%c0_20, %c0_21, %c0_22] : memref<1x2x32xf32, #tpu.memory_space<vmem>>, vector<1x2x32xf32>
    %33 = vector.shape_cast %32 : vector<1x2x32xf32> to vector<2x32xf32>
    %c0_23 = arith.constant 0 : index
    %c0_24 = arith.constant 0 : index
    %c0_25 = arith.constant 0 : index
    %34 = vector.load %arg4[%c0_23, %c0_24, %c0_25] : memref<1x2x32xf32, #tpu.memory_space<vmem>>, vector<1x2x32xf32>
    %35 = vector.shape_cast %34 : vector<1x2x32xf32> to vector<2x32xf32>
    %cst_26 = arith.constant dense<0.000000e+00> : vector<2x256xf32>
    %36 = tpu.matmul %33, %5, %cst_26 {dimension_numbers = #tpu.dot_dimension_numbers<[1], [0], [0], [1], [0, 0, 1, 1], [], []>} : vector<2x32xf32>, vector<32x256xf32>, vector<2x256xf32> -> vector<2x256xf32>
    %37 = vector.extract_strided_slice %36 {offsets = [0, 0], sizes = [2, 32], strides = [1, 1]} : vector<2x256xf32> to vector<2x32xf32>
    %38 = vector.extract_strided_slice %36 {offsets = [0, 128], sizes = [2, 128], strides = [1, 1]} : vector<2x256xf32> to vector<2x128xf32>
    %39 = vector.shape_cast %37 : vector<2x32xf32> to vector<2x1x32xf32>
    %40 = vector.broadcast %39 : vector<2x1x32xf32> to vector<2x8x32xf32>
    %41 = arith.addf %4, %40 : vector<2x8x32xf32>
    %42 = vector.broadcast %11 : vector<1x1x32xf32> to vector<2x8x32xf32>
    %43 = arith.addf %41, %42 : vector<2x8x32xf32>
    %44 = math.tanh %43 : vector<2x8x32xf32>
    %45 = vector.broadcast %13 : vector<1x1x32xf32> to vector<2x8x32xf32>
    %46 = arith.mulf %44, %45 : vector<2x8x32xf32>
    %cst_27 = arith.constant dense<0.000000e+00> : vector<2x8xf32>
    %47 = vector.multi_reduction <add>, %46, %cst_27 [2] : vector<2x8x32xf32> to vector<2x8xf32>
    %48 = arith.addf %47, %22 : vector<2x8xf32>
    %cst_28 = arith.constant dense<0xFF800000> : vector<2xf32>
    %49 = vector.multi_reduction <maximumf>, %48, %cst_28 [1] : vector<2x8xf32> to vector<2xf32>
    %50 = vector.shape_cast %49 : vector<2xf32> to vector<2x1xf32>
    %51 = vector.broadcast %50 : vector<2x1xf32> to vector<2x8xf32>
    %52 = arith.subf %48, %51 : vector<2x8xf32>
    %53 = math.exp %52 : vector<2x8xf32>
    %cst_29 = arith.constant dense<0.000000e+00> : vector<2xf32>
    %54 = vector.multi_reduction <add>, %53, %cst_29 [1] : vector<2x8xf32> to vector<2xf32>
    %55 = vector.shape_cast %54 : vector<2xf32> to vector<2x1xf32>
    %56 = tpu.reciprocal %55 {approx = true} : vector<2x1xf32> -> vector<2x1xf32>
    %57 = vector.broadcast %56 : vector<2x1xf32> to vector<2x8xf32>
    %58 = arith.mulf %53, %57 : vector<2x8xf32>
    %59 = vector.shape_cast %58 : vector<2x8xf32> to vector<2x8x1xf32>
    %60 = vector.broadcast %59 : vector<2x8x1xf32> to vector<2x8x32xf32>
    %61 = arith.mulf %60, %0 : vector<2x8x32xf32>
    %cst_30 = arith.constant dense<0.000000e+00> : vector<2x32xf32>
    %62 = vector.multi_reduction <add>, %61, %cst_30 [1] : vector<2x8x32xf32> to vector<2x32xf32>
    %c0_31 = arith.constant 0 : index
    %c0_32 = arith.constant 0 : index
    %c0_33 = arith.constant 0 : index
    %63 = vector.load %arg1[%c0_31, %c0_32, %c0_33] : memref<2x4x32xf32, #tpu.memory_space<vmem>>, vector<2x1x32xf32>
    %64 = vector.shape_cast %63 : vector<2x1x32xf32> to vector<2x32xf32>
    %cst_34 = arith.constant dense<0.000000e+00> : vector<2x32xf32>
    %65 = tpu.matmul %62, %7, %cst_34 {dimension_numbers = #tpu.dot_dimension_numbers<[1], [0], [0], [1], [0, 0, 1, 1], [], []>} : vector<2x32xf32>, vector<32x32xf32>, vector<2x32xf32> -> vector<2x32xf32>
    %66 = arith.addf %64, %65 : vector<2x32xf32>
    %67 = vector.broadcast %14 : vector<1x32xf32> to vector<2x32xf32>
    %68 = arith.addf %66, %67 : vector<2x32xf32>
    %cst_35 = arith.constant 0.000000e+00 : f32
    %69 = vector.broadcast %cst_35 : f32 to vector<2x32xf32>
    %70 = arith.maximumf %68, %69 : vector<2x32xf32>
    %cst_36 = arith.constant dense<0.000000e+00> : vector<2x128xf32>
    %71 = tpu.matmul %70, %6, %cst_36 {dimension_numbers = #tpu.dot_dimension_numbers<[1], [0], [0], [1], [0, 0, 1, 1], [], []>} : vector<2x32xf32>, vector<32x128xf32>, vector<2x128xf32> -> vector<2x128xf32>
    %72 = arith.addf %71, %38 : vector<2x128xf32>
    %73 = vector.broadcast %9 : vector<1x128xf32> to vector<2x128xf32>
    %74 = arith.addf %72, %73 : vector<2x128xf32>
    %75 = vector.broadcast %31 : vector<1x128xf32> to vector<2x128xf32>
    %76 = arith.mulf %74, %75 : vector<2x128xf32>
    %77 = math.tanh %76 : vector<2x128xf32>
    %cst_37 = arith.constant 5.000000e-01 : f32
    %78 = vector.broadcast %cst_37 : f32 to vector<2x128xf32>
    %79 = arith.mulf %78, %77 : vector<2x128xf32>
    %cst_38 = arith.constant 5.000000e-01 : f32
    %80 = vector.broadcast %cst_38 : f32 to vector<2x128xf32>
    %81 = arith.addf %79, %80 : vector<2x128xf32>
    %82 = vector.shape_cast %28 : vector<1x128xi1> to vector<1x128xi1>
    %83 = vector.broadcast %82 : vector<1x128xi1> to vector<2x128xi1>
    %84 = arith.select %83, %77, %81 : vector<2x128xi1>, vector<2x128xf32>
    %85 = vector.extract_strided_slice %84 {offsets = [0, 0], sizes = [2, 32], strides = [1, 1]} : vector<2x128xf32> to vector<2x32xf32>
    %86 = vector.extract_strided_slice %84 {offsets = [0, 32], sizes = [2, 32], strides = [1, 1]} : vector<2x128xf32> to vector<2x32xf32>
    %87 = vector.extract_strided_slice %84 {offsets = [0, 64], sizes = [2, 32], strides = [1, 1]} : vector<2x128xf32> to vector<2x32xf32>
    %88 = vector.extract_strided_slice %84 {offsets = [0, 96], sizes = [2, 32], strides = [1, 1]} : vector<2x128xf32> to vector<2x32xf32>
    %89 = arith.mulf %86, %35 : vector<2x32xf32>
    %90 = arith.mulf %85, %87 : vector<2x32xf32>
    %91 = arith.addf %89, %90 : vector<2x32xf32>
    %92 = math.tanh %91 : vector<2x32xf32>
    %93 = arith.mulf %88, %92 : vector<2x32xf32>
    %cst_39 = arith.constant dense<0.000000e+00> : vector<2x256xf32>
    %94 = tpu.matmul %93, %5, %cst_39 {dimension_numbers = #tpu.dot_dimension_numbers<[1], [0], [0], [1], [0, 0, 1, 1], [], []>} : vector<2x32xf32>, vector<32x256xf32>, vector<2x256xf32> -> vector<2x256xf32>
    %95 = vector.extract_strided_slice %94 {offsets = [0, 0], sizes = [2, 32], strides = [1, 1]} : vector<2x256xf32> to vector<2x32xf32>
    %96 = vector.extract_strided_slice %94 {offsets = [0, 32], sizes = [2, 32], strides = [1, 1]} : vector<2x256xf32> to vector<2x32xf32>
    %97 = vector.broadcast %15 : vector<1x32xf32> to vector<2x32xf32>
    %98 = arith.addf %96, %97 : vector<2x32xf32>
    %cst_40 = arith.constant dense<0xFF800000> : vector<2xf32>
    %99 = vector.multi_reduction <maximumf>, %98, %cst_40 [1] : vector<2x32xf32> to vector<2xf32>
    %100 = vector.shape_cast %99 : vector<2xf32> to vector<2x1xf32>
    %101 = vector.broadcast %100 : vector<2x1xf32> to vector<2x32xf32>
    %102 = arith.subf %98, %101 : vector<2x32xf32>
    %103 = math.exp %102 : vector<2x32xf32>
    %cst_41 = arith.constant dense<0.000000e+00> : vector<2xf32>
    %104 = vector.multi_reduction <add>, %103, %cst_41 [1] : vector<2x32xf32> to vector<2xf32>
    %105 = vector.shape_cast %104 : vector<2xf32> to vector<2x1xf32>
    %106 = math.log %105 : vector<2x1xf32>
    %107 = vector.broadcast %106 : vector<2x1xf32> to vector<2x32xf32>
    %108 = arith.subf %102, %107 : vector<2x32xf32>
    %c0_42 = arith.constant 0 : index
    %c0_43 = arith.constant 0 : index
    %c0_44 = arith.constant 0 : index
    %109 = vector.load %arg8[%c0_42, %c0_43, %c0_44] : memref<4x2x32xf32, #tpu.memory_space<vmem>>, vector<1x2x32xf32>
    %110 = vector.shape_cast %109 : vector<1x2x32xf32> to vector<2x32xf32>
    %111 = vector.shape_cast %108 : vector<2x32xf32> to vector<1x2x32xf32>
    tpu.vector_store %arg8[%c0_42, %c0_43, %c0_44], %111 {strides = array<i32>} : memref<4x2x32xf32, #tpu.memory_space<vmem>>, vector<1x2x32xf32>,
    %112 = vector.extract_strided_slice %94 {offsets = [0, 128], sizes = [2, 128], strides = [1, 1]} : vector<2x256xf32> to vector<2x128xf32>
    %113 = vector.shape_cast %95 : vector<2x32xf32> to vector<2x1x32xf32>
    %114 = vector.broadcast %113 : vector<2x1x32xf32> to vector<2x8x32xf32>
    %115 = arith.addf %4, %114 : vector<2x8x32xf32>
    %116 = vector.broadcast %11 : vector<1x1x32xf32> to vector<2x8x32xf32>
    %117 = arith.addf %115, %116 : vector<2x8x32xf32>
    %118 = math.tanh %117 : vector<2x8x32xf32>
    %119 = vector.broadcast %13 : vector<1x1x32xf32> to vector<2x8x32xf32>
    %120 = arith.mulf %118, %119 : vector<2x8x32xf32>
    %cst_45 = arith.constant dense<0.000000e+00> : vector<2x8xf32>
    %121 = vector.multi_reduction <add>, %120, %cst_45 [2] : vector<2x8x32xf32> to vector<2x8xf32>
    %122 = arith.addf %121, %22 : vector<2x8xf32>
    %cst_46 = arith.constant dense<0xFF800000> : vector<2xf32>
    %123 = vector.multi_reduction <maximumf>, %122, %cst_46 [1] : vector<2x8xf32> to vector<2xf32>
    %124 = vector.shape_cast %123 : vector<2xf32> to vector<2x1xf32>
    %125 = vector.broadcast %124 : vector<2x1xf32> to vector<2x8xf32>
    %126 = arith.subf %122, %125 : vector<2x8xf32>
    %127 = math.exp %126 : vector<2x8xf32>
    %cst_47 = arith.constant dense<0.000000e+00> : vector<2xf32>
    %128 = vector.multi_reduction <add>, %127, %cst_47 [1] : vector<2x8xf32> to vector<2xf32>
    %129 = vector.shape_cast %128 : vector<2xf32> to vector<2x1xf32>
    %130 = tpu.reciprocal %129 {approx = true} : vector<2x1xf32> -> vector<2x1xf32>
    %131 = vector.broadcast %130 : vector<2x1xf32> to vector<2x8xf32>
    %132 = arith.mulf %127, %131 : vector<2x8xf32>
    %133 = vector.shape_cast %132 : vector<2x8xf32> to vector<2x8x1xf32>
    %134 = vector.broadcast %133 : vector<2x8x1xf32> to vector<2x8x32xf32>
    %135 = arith.mulf %134, %0 : vector<2x8x32xf32>
    %cst_48 = arith.constant dense<0.000000e+00> : vector<2x32xf32>
    %136 = vector.multi_reduction <add>, %135, %cst_48 [1] : vector<2x8x32xf32> to vector<2x32xf32>
    %c0_49 = arith.constant 0 : index
    %c1 = arith.constant 1 : index
    %c0_50 = arith.constant 0 : index
    %137 = vector.load %arg1[%c0_49, %c1, %c0_50] : memref<2x4x32xf32, #tpu.memory_space<vmem>>, vector<2x1x32xf32>
    %138 = vector.shape_cast %137 : vector<2x1x32xf32> to vector<2x32xf32>
    %cst_51 = arith.constant dense<0.000000e+00> : vector<2x32xf32>
    %139 = tpu.matmul %136, %7, %cst_51 {dimension_numbers = #tpu.dot_dimension_numbers<[1], [0], [0], [1], [0, 0, 1, 1], [], []>} : vector<2x32xf32>, vector<32x32xf32>, vector<2x32xf32> -> vector<2x32xf32>
    %140 = arith.addf %138, %139 : vector<2x32xf32>
    %141 = vector.broadcast %14 : vector<1x32xf32> to vector<2x32xf32>
    %142 = arith.addf %140, %141 : vector<2x32xf32>
    %cst_52 = arith.constant 0.000000e+00 : f32
    %143 = vector.broadcast %cst_52 : f32 to vector<2x32xf32>
    %144 = arith.maximumf %142, %143 : vector<2x32xf32>
    %cst_53 = arith.constant dense<0.000000e+00> : vector<2x128xf32>
    %145 = tpu.matmul %144, %6, %cst_53 {dimension_numbers = #tpu.dot_dimension_numbers<[1], [0], [0], [1], [0, 0, 1, 1], [], []>} : vector<2x32xf32>, vector<32x128xf32>, vector<2x128xf32> -> vector<2x128xf32>
    %146 = arith.addf %145, %112 : vector<2x128xf32>
    %147 = vector.broadcast %9 : vector<1x128xf32> to vector<2x128xf32>
    %148 = arith.addf %146, %147 : vector<2x128xf32>
    %149 = vector.broadcast %31 : vector<1x128xf32> to vector<2x128xf32>
    %150 = arith.mulf %148, %149 : vector<2x128xf32>
    %151 = math.tanh %150 : vector<2x128xf32>
    %cst_54 = arith.constant 5.000000e-01 : f32
    %152 = vector.broadcast %cst_54 : f32 to vector<2x128xf32>
    %153 = arith.mulf %152, %151 : vector<2x128xf32>
    %cst_55 = arith.constant 5.000000e-01 : f32
    %154 = vector.broadcast %cst_55 : f32 to vector<2x128xf32>
    %155 = arith.addf %153, %154 : vector<2x128xf32>
    %156 = vector.shape_cast %28 : vector<1x128xi1> to vector<1x128xi1>
    %157 = vector.broadcast %156 : vector<1x128xi1> to vector<2x128xi1>
    %158 = arith.select %157, %151, %155 : vector<2x128xi1>, vector<2x128xf32>
    %159 = vector.extract_strided_slice %158 {offsets = [0, 0], sizes = [2, 32], strides = [1, 1]} : vector<2x128xf32> to vector<2x32xf32>
    %160 = vector.extract_strided_slice %158 {offsets = [0, 32], sizes = [2, 32], strides = [1, 1]} : vector<2x128xf32> to vector<2x32xf32>
    %161 = vector.extract_strided_slice %158 {offsets = [0, 64], sizes = [2, 32], strides = [1, 1]} : vector<2x128xf32> to vector<2x32xf32>
    %162 = vector.extract_strided_slice %158 {offsets = [0, 96], sizes = [2, 32], strides = [1, 1]} : vector<2x128xf32> to vector<2x32xf32>
    %163 = arith.mulf %160, %91 : vector<2x32xf32>
    %164 = arith.mulf %159, %161 : vector<2x32xf32>
    %165 = arith.addf %163, %164 : vector<2x32xf32>
    %166 = math.tanh %165 : vector<2x32xf32>
    %167 = arith.mulf %162, %166 : vector<2x32xf32>
    %cst_56 = arith.constant dense<0.000000e+00> : vector<2x256xf32>
    %168 = tpu.matmul %167, %5, %cst_56 {dimension_numbers = #tpu.dot_dimension_numbers<[1], [0], [0], [1], [0, 0, 1, 1], [], []>} : vector<2x32xf32>, vector<32x256xf32>, vector<2x256xf32> -> vector<2x256xf32>
    %169 = vector.extract_strided_slice %168 {offsets = [0, 0], sizes = [2, 32], strides = [1, 1]} : vector<2x256xf32> to vector<2x32xf32>
    %170 = vector.extract_strided_slice %168 {offsets = [0, 32], sizes = [2, 32], strides = [1, 1]} : vector<2x256xf32> to vector<2x32xf32>
    %171 = vector.broadcast %15 : vector<1x32xf32> to vector<2x32xf32>
    %172 = arith.addf %170, %171 : vector<2x32xf32>
    %cst_57 = arith.constant dense<0xFF800000> : vector<2xf32>
    %173 = vector.multi_reduction <maximumf>, %172, %cst_57 [1] : vector<2x32xf32> to vector<2xf32>
    %174 = vector.shape_cast %173 : vector<2xf32> to vector<2x1xf32>
    %175 = vector.broadcast %174 : vector<2x1xf32> to vector<2x32xf32>
    %176 = arith.subf %172, %175 : vector<2x32xf32>
    %177 = math.exp %176 : vector<2x32xf32>
    %cst_58 = arith.constant dense<0.000000e+00> : vector<2xf32>
    %178 = vector.multi_reduction <add>, %177, %cst_58 [1] : vector<2x32xf32> to vector<2xf32>
    %179 = vector.shape_cast %178 : vector<2xf32> to vector<2x1xf32>
    %180 = math.log %179 : vector<2x1xf32>
    %181 = vector.broadcast %180 : vector<2x1xf32> to vector<2x32xf32>
    %182 = arith.subf %176, %181 : vector<2x32xf32>
    %c1_59 = arith.constant 1 : index
    %c0_60 = arith.constant 0 : index
    %c0_61 = arith.constant 0 : index
    %183 = vector.load %arg8[%c1_59, %c0_60, %c0_61] : memref<4x2x32xf32, #tpu.memory_space<vmem>>, vector<1x2x32xf32>
    %184 = vector.shape_cast %183 : vector<1x2x32xf32> to vector<2x32xf32>
    %185 = vector.shape_cast %182 : vector<2x32xf32> to vector<1x2x32xf32>
    tpu.vector_store %arg8[%c1_59, %c0_60, %c0_61], %185 {strides = array<i32>} : memref<4x2x32xf32, #tpu.memory_space<vmem>>, vector<1x2x32xf32>,
    %186 = vector.extract_strided_slice %168 {offsets = [0, 128], sizes = [2, 128], strides = [1, 1]} : vector<2x256xf32> to vector<2x128xf32>
    %187 = vector.shape_cast %169 : vector<2x32xf32> to vector<2x1x32xf32>
    %188 = vector.broadcast %187 : vector<2x1x32xf32> to vector<2x8x32xf32>
    %189 = arith.addf %4, %188 : vector<2x8x32xf32>
    %190 = vector.broadcast %11 : vector<1x1x32xf32> to vector<2x8x32xf32>
    %191 = arith.addf %189, %190 : vector<2x8x32xf32>
    %192 = math.tanh %191 : vector<2x8x32xf32>
    %193 = vector.broadcast %13 : vector<1x1x32xf32> to vector<2x8x32xf32>
    %194 = arith.mulf %192, %193 : vector<2x8x32xf32>
    %cst_62 = arith.constant dense<0.000000e+00> : vector<2x8xf32>
    %195 = vector.multi_reduction <add>, %194, %cst_62 [2] : vector<2x8x32xf32> to vector<2x8xf32>
    %196 = arith.addf %195, %22 : vector<2x8xf32>
    %cst_63 = arith.constant dense<0xFF800000> : vector<2xf32>
    %197 = vector.multi_reduction <maximumf>, %196, %cst_63 [1] : vector<2x8xf32> to vector<2xf32>
    %198 = vector.shape_cast %197 : vector<2xf32> to vector<2x1xf32>
    %199 = vector.broadcast %198 : vector<2x1xf32> to vector<2x8xf32>
    %200 = arith.subf %196, %199 : vector<2x8xf32>
    %201 = math.exp %200 : vector<2x8xf32>
    %cst_64 = arith.constant dense<0.000000e+00> : vector<2xf32>
    %202 = vector.multi_reduction <add>, %201, %cst_64 [1] : vector<2x8xf32> to vector<2xf32>
    %203 = vector.shape_cast %202 : vector<2xf32> to vector<2x1xf32>
    %204 = tpu.reciprocal %203 {approx = true} : vector<2x1xf32> -> vector<2x1xf32>
    %205 = vector.broadcast %204 : vector<2x1xf32> to vector<2x8xf32>
    %206 = arith.mulf %201, %205 : vector<2x8xf32>
    %207 = vector.shape_cast %206 : vector<2x8xf32> to vector<2x8x1xf32>
    %208 = vector.broadcast %207 : vector<2x8x1xf32> to vector<2x8x32xf32>
    %209 = arith.mulf %208, %0 : vector<2x8x32xf32>
    %cst_65 = arith.constant dense<0.000000e+00> : vector<2x32xf32>
    %210 = vector.multi_reduction <add>, %209, %cst_65 [1] : vector<2x8x32xf32> to vector<2x32xf32>
    %c0_66 = arith.constant 0 : index
    %c2 = arith.constant 2 : index
    %c0_67 = arith.constant 0 : index
    %211 = vector.load %arg1[%c0_66, %c2, %c0_67] : memref<2x4x32xf32, #tpu.memory_space<vmem>>, vector<2x1x32xf32>
    %212 = vector.shape_cast %211 : vector<2x1x32xf32> to vector<2x32xf32>
    %cst_68 = arith.constant dense<0.000000e+00> : vector<2x32xf32>
    %213 = tpu.matmul %210, %7, %cst_68 {dimension_numbers = #tpu.dot_dimension_numbers<[1], [0], [0], [1], [0, 0, 1, 1], [], []>} : vector<2x32xf32>, vector<32x32xf32>, vector<2x32xf32> -> vector<2x32xf32>
    %214 = arith.addf %212, %213 : vector<2x32xf32>
    %215 = vector.broadcast %14 : vector<1x32xf32> to vector<2x32xf32>
    %216 = arith.addf %214, %215 : vector<2x32xf32>
    %cst_69 = arith.constant 0.000000e+00 : f32
    %217 = vector.broadcast %cst_69 : f32 to vector<2x32xf32>
    %218 = arith.maximumf %216, %217 : vector<2x32xf32>
    %cst_70 = arith.constant dense<0.000000e+00> : vector<2x128xf32>
    %219 = tpu.matmul %218, %6, %cst_70 {dimension_numbers = #tpu.dot_dimension_numbers<[1], [0], [0], [1], [0, 0, 1, 1], [], []>} : vector<2x32xf32>, vector<32x128xf32>, vector<2x128xf32> -> vector<2x128xf32>
    %220 = arith.addf %219, %186 : vector<2x128xf32>
    %221 = vector.broadcast %9 : vector<1x128xf32> to vector<2x128xf32>
    %222 = arith.addf %220, %221 : vector<2x128xf32>
    %223 = vector.broadcast %31 : vector<1x128xf32> to vector<2x128xf32>
    %224 = arith.mulf %222, %223 : vector<2x128xf32>
    %225 = math.tanh %224 : vector<2x128xf32>
    %cst_71 = arith.constant 5.000000e-01 : f32
    %226 = vector.broadcast %cst_71 : f32 to vector<2x128xf32>
    %227 = arith.mulf %226, %225 : vector<2x128xf32>
    %cst_72 = arith.constant 5.000000e-01 : f32
    %228 = vector.broadcast %cst_72 : f32 to vector<2x128xf32>
    %229 = arith.addf %227, %228 : vector<2x128xf32>
    %230 = vector.shape_cast %28 : vector<1x128xi1> to vector<1x128xi1>
    %231 = vector.broadcast %230 : vector<1x128xi1> to vector<2x128xi1>
    %232 = arith.select %231, %225, %229 : vector<2x128xi1>, vector<2x128xf32>
    %233 = vector.extract_strided_slice %232 {offsets = [0, 0], sizes = [2, 32], strides = [1, 1]} : vector<2x128xf32> to vector<2x32xf32>
    %234 = vector.extract_strided_slice %232 {offsets = [0, 32], sizes = [2, 32], strides = [1, 1]} : vector<2x128xf32> to vector<2x32xf32>
    %235 = vector.extract_strided_slice %232 {offsets = [0, 64], sizes = [2, 32], strides = [1, 1]} : vector<2x128xf32> to vector<2x32xf32>
    %236 = vector.extract_strided_slice %232 {offsets = [0, 96], sizes = [2, 32], strides = [1, 1]} : vector<2x128xf32> to vector<2x32xf32>
    %237 = arith.mulf %234, %165 : vector<2x32xf32>
    %238 = arith.mulf %233, %235 : vector<2x32xf32>
    %239 = arith.addf %237, %238 : vector<2x32xf32>
    %240 = math.tanh %239 : vector<2x32xf32>
    %241 = arith.mulf %236, %240 : vector<2x32xf32>
    %cst_73 = arith.constant dense<0.000000e+00> : vector<2x256xf32>
    %242 = tpu.matmul %241, %5, %cst_73 {dimension_numbers = #tpu.dot_dimension_numbers<[1], [0], [0], [1], [0, 0, 1, 1], [], []>} : vector<2x32xf32>, vector<32x256xf32>, vector<2x256xf32> -> vector<2x256xf32>
    %243 = vector.extract_strided_slice %242 {offsets = [0, 0], sizes = [2, 32], strides = [1, 1]} : vector<2x256xf32> to vector<2x32xf32>
    %244 = vector.extract_strided_slice %242 {offsets = [0, 32], sizes = [2, 32], strides = [1, 1]} : vector<2x256xf32> to vector<2x32xf32>
    %245 = vector.broadcast %15 : vector<1x32xf32> to vector<2x32xf32>
    %246 = arith.addf %244, %245 : vector<2x32xf32>
    %cst_74 = arith.constant dense<0xFF800000> : vector<2xf32>
    %247 = vector.multi_reduction <maximumf>, %246, %cst_74 [1] : vector<2x32xf32> to vector<2xf32>
    %248 = vector.shape_cast %247 : vector<2xf32> to vector<2x1xf32>
    %249 = vector.broadcast %248 : vector<2x1xf32> to vector<2x32xf32>
    %250 = arith.subf %246, %249 : vector<2x32xf32>
    %251 = math.exp %250 : vector<2x32xf32>
    %cst_75 = arith.constant dense<0.000000e+00> : vector<2xf32>
    %252 = vector.multi_reduction <add>, %251, %cst_75 [1] : vector<2x32xf32> to vector<2xf32>
    %253 = vector.shape_cast %252 : vector<2xf32> to vector<2x1xf32>
    %254 = math.log %253 : vector<2x1xf32>
    %255 = vector.broadcast %254 : vector<2x1xf32> to vector<2x32xf32>
    %256 = arith.subf %250, %255 : vector<2x32xf32>
    %c2_76 = arith.constant 2 : index
    %c0_77 = arith.constant 0 : index
    %c0_78 = arith.constant 0 : index
    %257 = vector.load %arg8[%c2_76, %c0_77, %c0_78] : memref<4x2x32xf32, #tpu.memory_space<vmem>>, vector<1x2x32xf32>
    %258 = vector.shape_cast %257 : vector<1x2x32xf32> to vector<2x32xf32>
    %259 = vector.shape_cast %256 : vector<2x32xf32> to vector<1x2x32xf32>
    tpu.vector_store %arg8[%c2_76, %c0_77, %c0_78], %259 {strides = array<i32>} : memref<4x2x32xf32, #tpu.memory_space<vmem>>, vector<1x2x32xf32>,
    %260 = vector.extract_strided_slice %242 {offsets = [0, 128], sizes = [2, 128], strides = [1, 1]} : vector<2x256xf32> to vector<2x128xf32>
    %261 = vector.shape_cast %243 : vector<2x32xf32> to vector<2x1x32xf32>
    %262 = vector.broadcast %261 : vector<2x1x32xf32> to vector<2x8x32xf32>
    %263 = arith.addf %4, %262 : vector<2x8x32xf32>
    %264 = vector.broadcast %11 : vector<1x1x32xf32> to vector<2x8x32xf32>
    %265 = arith.addf %263, %264 : vector<2x8x32xf32>
    %266 = math.tanh %265 : vector<2x8x32xf32>
    %267 = vector.broadcast %13 : vector<1x1x32xf32> to vector<2x8x32xf32>
    %268 = arith.mulf %266, %267 : vector<2x8x32xf32>
    %cst_79 = arith.constant dense<0.000000e+00> : vector<2x8xf32>
    %269 = vector.multi_reduction <add>, %268, %cst_79 [2] : vector<2x8x32xf32> to vector<2x8xf32>
    %270 = arith.addf %269, %22 : vector<2x8xf32>
    %cst_80 = arith.constant dense<0xFF800000> : vector<2xf32>
    %271 = vector.multi_reduction <maximumf>, %270, %cst_80 [1] : vector<2x8xf32> to vector<2xf32>
    %272 = vector.shape_cast %271 : vector<2xf32> to vector<2x1xf32>
    %273 = vector.broadcast %272 : vector<2x1xf32> to vector<2x8xf32>
    %274 = arith.subf %270, %273 : vector<2x8xf32>
    %275 = math.exp %274 : vector<2x8xf32>
    %cst_81 = arith.constant dense<0.000000e+00> : vector<2xf32>
    %276 = vector.multi_reduction <add>, %275, %cst_81 [1] : vector<2x8xf32> to vector<2xf32>
    %277 = vector.shape_cast %276 : vector<2xf32> to vector<2x1xf32>
    %278 = tpu.reciprocal %277 {approx = true} : vector<2x1xf32> -> vector<2x1xf32>
    %279 = vector.broadcast %278 : vector<2x1xf32> to vector<2x8xf32>
    %280 = arith.mulf %275, %279 : vector<2x8xf32>
    %281 = vector.shape_cast %280 : vector<2x8xf32> to vector<2x8x1xf32>
    %282 = vector.broadcast %281 : vector<2x8x1xf32> to vector<2x8x32xf32>
    %283 = arith.mulf %282, %0 : vector<2x8x32xf32>
    %cst_82 = arith.constant dense<0.000000e+00> : vector<2x32xf32>
    %284 = vector.multi_reduction <add>, %283, %cst_82 [1] : vector<2x8x32xf32> to vector<2x32xf32>
    %c0_83 = arith.constant 0 : index
    %c3 = arith.constant 3 : index
    %c0_84 = arith.constant 0 : index
    %285 = vector.load %arg1[%c0_83, %c3, %c0_84] : memref<2x4x32xf32, #tpu.memory_space<vmem>>, vector<2x1x32xf32>
    %286 = vector.shape_cast %285 : vector<2x1x32xf32> to vector<2x32xf32>
    %cst_85 = arith.constant dense<0.000000e+00> : vector<2x32xf32>
    %287 = tpu.matmul %284, %7, %cst_85 {dimension_numbers = #tpu.dot_dimension_numbers<[1], [0], [0], [1], [0, 0, 1, 1], [], []>} : vector<2x32xf32>, vector<32x32xf32>, vector<2x32xf32> -> vector<2x32xf32>
    %288 = arith.addf %286, %287 : vector<2x32xf32>
    %289 = vector.broadcast %14 : vector<1x32xf32> to vector<2x32xf32>
    %290 = arith.addf %288, %289 : vector<2x32xf32>
    %cst_86 = arith.constant 0.000000e+00 : f32
    %291 = vector.broadcast %cst_86 : f32 to vector<2x32xf32>
    %292 = arith.maximumf %290, %291 : vector<2x32xf32>
    %cst_87 = arith.constant dense<0.000000e+00> : vector<2x128xf32>
    %293 = tpu.matmul %292, %6, %cst_87 {dimension_numbers = #tpu.dot_dimension_numbers<[1], [0], [0], [1], [0, 0, 1, 1], [], []>} : vector<2x32xf32>, vector<32x128xf32>, vector<2x128xf32> -> vector<2x128xf32>
    %294 = arith.addf %293, %260 : vector<2x128xf32>
    %295 = vector.broadcast %9 : vector<1x128xf32> to vector<2x128xf32>
    %296 = arith.addf %294, %295 : vector<2x128xf32>
    %297 = vector.broadcast %31 : vector<1x128xf32> to vector<2x128xf32>
    %298 = arith.mulf %296, %297 : vector<2x128xf32>
    %299 = math.tanh %298 : vector<2x128xf32>
    %cst_88 = arith.constant 5.000000e-01 : f32
    %300 = vector.broadcast %cst_88 : f32 to vector<2x128xf32>
    %301 = arith.mulf %300, %299 : vector<2x128xf32>
    %cst_89 = arith.constant 5.000000e-01 : f32
    %302 = vector.broadcast %cst_89 : f32 to vector<2x128xf32>
    %303 = arith.addf %301, %302 : vector<2x128xf32>
    %304 = vector.shape_cast %28 : vector<1x128xi1> to vector<1x128xi1>
    %305 = vector.broadcast %304 : vector<1x128xi1> to vector<2x128xi1>
    %306 = arith.select %305, %299, %303 : vector<2x128xi1>, vector<2x128xf32>
    %307 = vector.extract_strided_slice %306 {offsets = [0, 0], sizes = [2, 32], strides = [1, 1]} : vector<2x128xf32> to vector<2x32xf32>
    %308 = vector.extract_strided_slice %306 {offsets = [0, 32], sizes = [2, 32], strides = [1, 1]} : vector<2x128xf32> to vector<2x32xf32>
    %309 = vector.extract_strided_slice %306 {offsets = [0, 64], sizes = [2, 32], strides = [1, 1]} : vector<2x128xf32> to vector<2x32xf32>
    %310 = vector.extract_strided_slice %306 {offsets = [0, 96], sizes = [2, 32], strides = [1, 1]} : vector<2x128xf32> to vector<2x32xf32>
    %311 = arith.mulf %308, %239 : vector<2x32xf32>
    %312 = arith.mulf %307, %309 : vector<2x32xf32>
    %313 = arith.addf %311, %312 : vector<2x32xf32>
    %314 = math.tanh %313 : vector<2x32xf32>
    %315 = arith.mulf %310, %314 : vector<2x32xf32>
    %cst_90 = arith.constant dense<0.000000e+00> : vector<2x32xf32>
    %316 = tpu.matmul %315, %8, %cst_90 {dimension_numbers = #tpu.dot_dimension_numbers<[1], [0], [0], [1], [0, 0, 1, 1], [], []>} : vector<2x32xf32>, vector<32x32xf32>, vector<2x32xf32> -> vector<2x32xf32>
    %317 = vector.broadcast %15 : vector<1x32xf32> to vector<2x32xf32>
    %318 = arith.addf %316, %317 : vector<2x32xf32>
    %cst_91 = arith.constant dense<0xFF800000> : vector<2xf32>
    %319 = vector.multi_reduction <maximumf>, %318, %cst_91 [1] : vector<2x32xf32> to vector<2xf32>
    %320 = vector.shape_cast %319 : vector<2xf32> to vector<2x1xf32>
    %321 = vector.broadcast %320 : vector<2x1xf32> to vector<2x32xf32>
    %322 = arith.subf %318, %321 : vector<2x32xf32>
    %323 = math.exp %322 : vector<2x32xf32>
    %cst_92 = arith.constant dense<0.000000e+00> : vector<2xf32>
    %324 = vector.multi_reduction <add>, %323, %cst_92 [1] : vector<2x32xf32> to vector<2xf32>
    %325 = vector.shape_cast %324 : vector<2xf32> to vector<2x1xf32>
    %326 = math.log %325 : vector<2x1xf32>
    %327 = vector.broadcast %326 : vector<2x1xf32> to vector<2x32xf32>
    %328 = arith.subf %322, %327 : vector<2x32xf32>
    %c3_93 = arith.constant 3 : index
    %c0_94 = arith.constant 0 : index
    %c0_95 = arith.constant 0 : index
    %329 = vector.load %arg8[%c3_93, %c0_94, %c0_95] : memref<4x2x32xf32, #tpu.memory_space<vmem>>, vector<1x2x32xf32>
    %330 = vector.shape_cast %329 : vector<1x2x32xf32> to vector<2x32xf32>
    %331 = vector.shape_cast %328 : vector<2x32xf32> to vector<1x2x32xf32>
    tpu.vector_store %arg8[%c3_93, %c0_94, %c0_95], %331 {strides = array<i32>} : memref<4x2x32xf32, #tpu.memory_space<vmem>>, vector<1x2x32xf32>,
    %c0_96 = arith.constant 0 : index
    %c0_97 = arith.constant 0 : index
    %c0_98 = arith.constant 0 : index
    %332 = vector.load %arg9[%c0_96, %c0_97, %c0_98] : memref<2x2x32xf32, #tpu.memory_space<vmem>>, vector<1x2x32xf32>
    %333 = vector.shape_cast %332 : vector<1x2x32xf32> to vector<2x32xf32>
    %334 = vector.shape_cast %315 : vector<2x32xf32> to vector<1x2x32xf32>
    tpu.vector_store %arg9[%c0_96, %c0_97, %c0_98], %334 {strides = array<i32>} : memref<2x2x32xf32, #tpu.memory_space<vmem>>, vector<1x2x32xf32>,
    %c1_99 = arith.constant 1 : index
    %c0_100 = arith.constant 0 : index
    %c0_101 = arith.constant 0 : index
    %335 = vector.load %arg9[%c1_99, %c0_100, %c0_101] : memref<2x2x32xf32, #tpu.memory_space<vmem>>, vector<1x2x32xf32>
    %336 = vector.shape_cast %335 : vector<1x2x32xf32> to vector<2x32xf32>
    %337 = vector.shape_cast %313 : vector<2x32xf32> to vector<1x2x32xf32>
    tpu.vector_store %arg9[%c1_99, %c0_100, %c0_101], %337 {strides = array<i32>} : memref<2x2x32xf32, #tpu.memory_space<vmem>>, vector<1x2x32xf32>,
    return
  }
  func.func @transform_0(%arg0: i32) -> (i32, i32, i32) {
    %c0_i32 = arith.constant 0 : i32
    %c0_i32_0 = arith.constant 0 : i32
    %c0_i32_1 = arith.constant 0 : i32
    %c0_i32_2 = arith.constant 0 : i32
    return %c0_i32, %c0_i32_0, %c0_i32_1 : i32, i32, i32
  }
  func.func @transform_1(%arg0: i32) -> (i32, i32, i32) {
    %c0_i32 = arith.constant 0 : i32
    %c0_i32_0 = arith.constant 0 : i32
    %c0_i32_1 = arith.constant 0 : i32
    %c0_i32_2 = arith.constant 0 : i32
    return %c0_i32, %c0_i32_0, %c0_i32_1 : i32, i32, i32
  }
  func.func @transform_2(%arg0: i32) -> (i32, i32, i32) {
    %c0_i32 = arith.constant 0 : i32
    %c0_i32_0 = arith.constant 0 : i32
    %c0_i32_1 = arith.constant 0 : i32
    %c0_i32_2 = arith.constant 0 : i32
    return %c0_i32, %c0_i32_0, %c0_i32_1 : i32, i32, i32
  }
  func.func @transform_3(%arg0: i32) -> (i32, i32, i32) {
    %c0_i32 = arith.constant 0 : i32
    %c0_i32_0 = arith.constant 0 : i32
    %c0_i32_1 = arith.constant 0 : i32
    %c0_i32_2 = arith.constant 0 : i32
    return %c0_i32, %c0_i32_0, %c0_i32_1 : i32, i32, i32
  }
  func.func @transform_4(%arg0: i32) -> (i32, i32) {
    %c0_i32 = arith.constant 0 : i32
    %c0_i32_0 = arith.constant 0 : i32
    %c0_i32_1 = arith.constant 0 : i32
    return %c0_i32, %c0_i32_0 : i32, i32
  }
  func.func @transform_5(%arg0: i32) -> (i32, i32) {
    %c0_i32 = arith.constant 0 : i32
    %c0_i32_0 = arith.constant 0 : i32
    %c0_i32_1 = arith.constant 0 : i32
    return %c0_i32, %c0_i32_0 : i32, i32
  }
  func.func @transform_6(%arg0: i32) -> (i32, i32) {
    %c0_i32 = arith.constant 0 : i32
    %c0_i32_0 = arith.constant 0 : i32
    %c0_i32_1 = arith.constant 0 : i32
    return %c0_i32, %c0_i32_0 : i32, i32
  }
  func.func @transform_7(%arg0: i32) -> (i32, i32, i32) {
    %c0_i32 = arith.constant 0 : i32
    %c0_i32_0 = arith.constant 0 : i32
    %c0_i32_1 = arith.constant 0 : i32
    %c0_i32_2 = arith.constant 0 : i32
    return %c0_i32, %c0_i32_0, %c0_i32_1 : i32, i32, i32
  }
  func.func @transform_8(%arg0: i32) -> (i32, i32, i32) {
    %c0_i32 = arith.constant 0 : i32
    %c0_i32_0 = arith.constant 0 : i32
    %c0_i32_1 = arith.constant 0 : i32
    %c0_i32_2 = arith.constant 0 : i32
    return %c0_i32, %c0_i32_0, %c0_i32_1 : i32, i32, i32
  }
}

</mosaic_0001>

<bundles_post_ra>
// kernel: att_bilstm_rnn_decoder.1
= control target key start
LH: loop header
LB: loop body
LE: loop exit
PB: predicated region body
PF: predicated region fallthrough
CT: control target
= control target key end

     0   :  { %14 = vsyncpa [#allocation3], 0  ;;  %s2946_s0 = inlined_call_operand.vmem [shape: f32[2,4,32], index: 0, kind: input, shape index: {}]   ;;  %s2947_s1 = inlined_call_operand.vmem [shape: f32[2,8,32], index: 1, kind: input, shape index: {}]   ;;  %s2948_s2 = inlined_call_operand.vmem [shape: f32[1,2,32], index: 2, kind: input, shape index: {}]   ;;  %s2949_s3 = inlined_call_operand.vmem [shape: f32[1,2,32], index: 3, kind: input, shape index: {}]   ;;  %s2950_s4 = inlined_call_operand.vmem [shape: s32[2,1], index: 4, kind: input, shape index: {}]   ;;  %s2951_s5 = inlined_call_operand.hbm [shape: f32[32,640], index: 5, kind: input, shape index: {}]   ;;  %s2952_s6 = inlined_call_operand.vmem [shape: f32[1,256], index: 6, kind: input, shape index: {}]   ;;  %s2953_s7 = inlined_call_operand.hbm [shape: f32[4,2,32], index: 7, kind: output, shape index: {0}]   ;;  %s2954_s8 = inlined_call_operand.vmem [shape: f32[2,2,32], index: 8, kind: output, shape index: {1}]  }
   0x1   :  { %15 = vsyncpa [#allocation4], 0  ;;  %s2369_s27 = smov [#allocation2]  }
   0x2   :  { %s31_s28 = sshll.u32 %s2369_s27, 4  ;;  %s32_s28 = int_to_ptr.vmem [resolvable:$true] %s31_s28 }
   0x3   :  { %s2333_s29 = scalar_lea.vmem %s32_s28, 2560  ;;  %p2338_p1 = scmp.lt.s32.totalorder %s32_s28, %s32_s28 }
   0x4   :  { %p2334_p0 = scmp.ne.s32.totalorder %s32_s28, %s2333_s29  ;;  %p2339_p2 = scmp.lt.s32.totalorder %s2333_s29, %s2333_s29 }
   0x6   :  { %p2340_p3 = por %p2339_p2, %p2338_p1 }
   0x8   :  { %p2341_p4 = pnand %p2340_p3, %p2334_p0 }
   0xa   :  { %2344 = shalt.err (!%p2341_p4)
}
   0xb   :  { %s2370_s30 = smov 640   ;;  %s2371_s9 = smov 40  }
   0xc   :  { %37 = dma.hbm_to_vmem [thread:$0]  %s2951_s5, 2560, %s32_s28, [#allocation3], %s2370_s30, %s2370_s30, %s2371_s9  }
   0xd   :  { %2365 = dma.done.wait [#allocation3], 2560  }
   0xe   :  { %2366 = vsyncadd [#allocation3], 4294964736  ;;  %v2372_v0 = vmov 0.0   ;;  %v2373_v1 = vmov 0   ;;  %v2432_v2 = vld [vmem:[#allocation2 + $0x80] sm:$0xff]  ;;  %v2434_v3 = vld [vmem:[#allocation2 + $0x78] sm:$0xff]  ;;  %v149_v19 = vlaneseq }
   0xf   :  { %230 = vmatprep.mubr.f32.mxu1 %v2372_v0  ;;  %2244 = vset.pattern.permute.xlu0 %v2373_v1  ;;  %v48_v4 = vld [vmem:[#allocation2 + $0x90] sm:$0xff]  ;;  %v2437_v5 = vld [vmem:[#allocation2 + $0x58] sm:$0xff]  ;;  %v47_v7 = vld [vmem:[#allocation2 + $0x68] sm:$0xff]  ;;  %vm49_vm0 = vcmask 261120   ;;  %v2375_v25 = vmov -1e+30  }
  0x10   :  { %2245 = vset.pattern.permute.xlu1 %v2373_v1  ;;  %190 = vmatprep.subr.mxu1 %v2432_v2  ;;  %v2439_v6 = vld [vmem:[#allocation2 + $0x50] sm:$0xff]  ;;  %v46_v9 = vld [vmem:[#allocation2 + $0x40] sm:$0xff]  ;;  %v2445_v10 = vld [vmem:[#allocation2 + $0x28] sm:$0xff]  ;;  %v242_v21 = vshrl.u32 %v149_v19, 7  ;;  %v2488_v22 = vand.u32 127, %v149_v19  ;;  %vm328_vm2 = vcmask 1041409  }
  0x11   :  { %2120 = vmatprep.subr.mxu0 %v48_v4  ;;  %191 = vmatpush1.msra.mxu1 %v2434_v3  ;;  %v2442_v8 = vld [vmem:[#allocation2 + $0x30] sm:$0xff]  ;;  %v2448_v11 = vld [vmem:[#allocation2 + $0x8] sm:$0xff]  ;;  %v45_v12 = vld [vmem:[#allocation2 + $0x18] sm:$0xff]  ;;  %v2376_v28 = vmov 1966171168   ;;  %vm331_vm3 = vcmask 58368  }
  0x12   :  { %2121 = vmatpush3.msra.mxu0 %v48_v4  ;;  %192 = vmatprep.subr.mxu1 %v2437_v5  ;;  %v2451_v13 = vld [vmem:[#allocation2] sm:$0xff]  ;;  %v2466_v16 = vld [vmem:[%s2947_s1 + $0x8] sm:$0xff]  ;;  %v2490_v23 = vsub.s32 1, %v242_v21  ;;  %v239_v29 = vunpack.c.l.s4 %v2376_v28  ;;  %v2497_v34 = vsub.s32 0, %v242_v21  ;;  %v2523_v60 = vsub.s32 %v2488_v22, %v242_v21  ;;  %s2380_s29 = smov 32   ;;  %s2381_s24 = smov [#allocation5]  }
  0x13   :  { %2122 = vmatprep.subr.mxu0 %v47_v7  ;;  %193 = vmatpush1.msra.mxu1 %v2439_v6  ;;  %v161_v14 = vld [vmem:[%s2948_s2] sm:$0x3]  ;;  %s2374_s2 = smov 96   ;;  %vm2377_vm4 = vmmov 0   ;;  %vm157_vm5 = vcmp.ge.s32.totalorder %v2488_v22, 64  ;;  %vm158_vm6 = vcmp.lt.s32.totalorder %v2488_v22, 96 }
  0x14   :  { %2123 = vmatpush3.msra.mxu0 %v47_v7  ;;  %194 = vmatprep.subr.mxu1 %v2442_v8  ;;  %v2460_v15 = vld [vmem:[%s2947_s1] sm:$0xff]  ;;  %v240_v30 = vunpack.c.0.s8 %v239_v29  ;;  %vm2614_vm7 = vmand %vm157_vm5, %vm158_vm6  ;;  %vm691_vm8 = vcmask 517376   ;;  %vm702_vm9 = vcmask 254976   ;;  %s2035_s25 = sshll.u32 %s2381_s24, 4  ;;  %s2036_s25 = int_to_ptr.vmem [resolvable:$true] %s2035_s25 }
  0x15   :  { %2124 = vmatprep.subr.mxu0 %v46_v9  ;;  %195 = vmatpush1.msra.mxu1 %v2445_v10  ;;  %v2471_v17 = vld [vmem:[%s2952_s6 + $0x1] ss:$0 sm:$0xff]  ;;  %p2350_p6 = scmp.lt.s32.totalorder %s2036_s25, %s2036_s25 }
  0x16   :  { %2125 = vmatpush3.msra.mxu0 %v46_v9  ;;  %196 = vmatprep.subr.mxu1 %v2448_v11  ;;  %v151_v18 = vld [vmem:[%s2950_s4] sm:$0x3]  ;;  %v2494_v31 = vsub.s32 %v240_v30, %v242_v21  ;;  %s2378_s4 = smov 64  }
  0x17   :  { %2126 = vmatprep.subr.mxu0 %v45_v12  ;;  %197 = vmatpush1.msra.mxu1 %v2451_v13 }
  0x18   :  { %2127 = vmatpush3.msra.mxu0 %v45_v12  ;;  %2053 = vmatmul.mubr.msk.f32.vlgmr.msra.gmra.mxu1 %vm49_vm0, %v161_v14 }
  0x19   :  { %2128 = vmatprep.mubr.msk.f32.mxu0 %vm49_vm0, %v2460_v15  ;;  %282 = vrot.lane.b32.xlu0 %v2471_v17, %s2374_s2 }
  0x1a   :  { %2129 = vmatmul.mubr.msk.f32.vlgmr.msra.gmra.mxu0 %vm49_vm0, %v2466_v16  ;;  %2131 = vmatprep.subr.mxu0 %v2372_v0 }
  0x1b   :  { %2142 = vmatprep.subr.mxu1 %v2372_v0  ;;  %2139 = vmatprep.mubr.msk.f32.mxu0 %vm2377_vm4, %v2372_v0 }
  0x1c   :  { %2150 = vmatprep.mubr.msk.f32.mxu1 %vm2377_vm4, %v2372_v0 }
  0x1d   :  { %153 = vperm.xlu0 %2244, %v151_v18  }
  0x8b   :  { %v2486_v20 = vpop.permute.xlu0 %282 }
  0x98   :  { %v154_v24 = vpop.permute.xlu0 %153 }
  0x99   :  { %vm155_vm1 = vcmp.lt.s32.totalorder %v2488_v22, %v154_v24 }
  0x9a   :  { %v156_v26 = vsel %vm155_vm1, 0.0, %v2375_v25 }
  0x9b   :  { %v304_v27 = vrot.slane %v156_v26, %v2490_v23  ;;  %v297_v52 = vrot.slane %v156_v26, %v2497_v34 }
  0x9d   :  { %306 = vbcast.lane.b32.xlu0 %v304_v27, 256 }
  0xd8   :  { %v232_v32 = vpop.f32.mrf.mxu1 }
  0xd9   :  { %v244_v33 = vrot.slane %v232_v32, %v2494_v31 }
  0xda   :  { %v2499_v35 = vpop.f32.mrf.mxu0 }
  0xdb   :  { %v245_v36 = vcombine.high %v244_v33, %v244_v33  ;;  %v252_v37 = vrot.slane %v244_v33, %v2494_v31 }
  0xdc   :  { %v2504_v40 = vpop.f32.mrf.mxu0 }
  0xdd   :  { %v259_v38 = vrot.slane %v245_v36, %v2494_v31  ;;  %v263_v39 = vrot.slane %v252_v37, %v2497_v34 }
  0xdf   :  { %v267_v41 = vrot.slane %v259_v38, %v2497_v34  ;;  %v270_v42 = vadd.f32 %v263_v39, %v2504_v40 }
  0xe1   :  { %v271_v43 = vadd.f32 %v2499_v35, %v267_v41  ;;  %v278_v44 = vadd.f32 %v2471_v17, %v270_v42  ;;  %v2537_v42 = vld [vmem:[#allocation2 + $0x98] sm:$0xff] }
  0xe2   :  { %2132 = vmatpush3.msra.mxu0 %v2537_v42 }
  0xe3   :  { %v279_v45 = vadd.f32 %v2471_v17, %v271_v43  ;;  %2246 = vtanh.f32 %v278_v44  ;;  %2133 = vmatprep.subr.mxu0 %v2372_v0  ;;  %v2541_v43 = vld [vmem:[#allocation2 + $0x70] sm:$0xff]  ;;  %v2545_v44 = vld [vmem:[#allocation2 + $0x48] sm:$0xff] }
  0xe4   :  { %2134 = vmatpush3.msra.mxu0 %v2541_v43 }
  0xe5   :  { %2248 = vtanh.f32 %v279_v45  ;;  %2135 = vmatprep.subr.mxu0 %v2372_v0  ;;  %v2547_v45 = vld [vmem:[#allocation2 + $0x20] sm:$0xff] }
  0xe6   :  { %2136 = vmatpush3.msra.mxu0 %v2545_v44 }
  0xe7   :  { %2137 = vmatprep.subr.mxu0 %v2372_v0 }
  0xe8   :  { %2138 = vmatpush3.msra.mxu0 %v2547_v45 }
  0xe9   :  { %643 = vmatprep.subr.mxu0 %v2432_v2 }
  0xf0   :  { %v2247_v46 = vpop.eup %2246 }
  0xf1   :  { %v285_v47 = vmul.f32 %v2247_v46, %v2486_v20 }
  0xf2   :  { %v2249_v48 = vpop.eup %2248 }
  0xf3   :  { %v287_v49 = vsel %vm49_vm0, %v285_v47, 0.0  ;;  %v286_v50 = vmul.f32 %v2249_v48, %v2486_v20 }
  0xf4   :  { %288 = vadd.xlane.f32.xlu1 %v287_v49 }
  0xf5   :  { %v290_v51 = vsel %vm49_vm0, %v286_v50, 0.0 }
  0xf8   :  { %291 = vadd.xlane.f32.xlu1 %v290_v51 }
 0x109   :  { %299 = vbcast.lane.b32.xlu1 %v297_v52, 256 }
 0x10f   :  { %v2519_v57 = vpop.permute.xlu0 %306 }
 0x17d   :  { %v289_v53 = vpop.xlane.xlu1 %288 }
 0x181   :  { %v292_v54 = vpop.xlane.xlu1 %291 }
 0x182   :  { %v311_v58 = vadd.f32 %v2519_v57, %v292_v54 }
 0x185   :  { %v2516_v55 = vpop.permute.xlu1 %299 }
 0x186   :  { %v310_v56 = vadd.f32 %v2516_v55, %v289_v53 }
 0x188   :  { %315 = vperm.xlu0 %2244, %v310_v56  }
 0x18c   :  { %318 = vperm.xlu0 %2244, %v311_v58  }
 0x203   :  { %v316_v59 = vpop.permute.xlu0 %315 }
 0x204   :  { %v323_v62 = vrot.slane %v316_v59, %v2523_v60 }
 0x207   :  { %v319_v61 = vpop.permute.xlu0 %318 }
 0x208   :  { %v327_v63 = vrot.slane %v319_v61, %v2523_v60 }
 0x20a   :  { %v329_v1 = vsel %vm328_vm2, %v327_v63, %v323_v62 }
 0x20b   :  { %v332_v4 = vsel %vm331_vm3, %v329_v1, -inf }
 0x20c   :  { %333 = vmax.xlane.f32.xlu0 %v332_v4 }
 0x295   :  { %v334_v7 = vpop.xlane.xlu0 %333 }
 0x296   :  { %v339_v9 = vrot.slane %v334_v7, %v2497_v34  ;;  %v343_v12 = vrot.slane %v334_v7, %v2490_v23 }
 0x298   :  { %v346_v14 = vsub.f32 %v310_v56, %v339_v9  ;;  %v347_v18 = vsub.f32 %v311_v58, %v343_v12  ;;  %v2574_v12 = vld [vmem:[#allocation2 + $0x88] sm:$0xff] }
 0x299   :  { %2143 = vmatpush3.msra.mxu1 %v2574_v12 }
 0x29a   :  { %v348_v19 = vmul.f32 1.442695, %v346_v14  ;;  %v350_v21 = vmul.f32 1.442695, %v347_v18  ;;  %v2576_v14 = vld [vmem:[#allocation2 + $0x60] sm:$0xff]  ;;  %2144 = vmatprep.subr.mxu1 %v2372_v0  ;;  %v2580_v18 = vld [vmem:[#allocation2 + $0x38] sm:$0xff] }
 0x29b   :  { %2145 = vmatpush3.msra.mxu1 %v2576_v14 }
 0x29c   :  { %2250 = vpow2.f32 %v348_v19  ;;  %2146 = vmatprep.subr.mxu1 %v2372_v0  ;;  %v2584_v19 = vld [vmem:[#allocation2 + $0x10] sm:$0xff] }
 0x29d   :  { %2252 = vpow2.f32 %v350_v21  ;;  %2147 = vmatpush3.msra.mxu1 %v2580_v18  ;;  %v413_v21 = vld [vmem:[%s2946_s0] sm:$0x1] }
 0x29e   :  { %2148 = vmatprep.subr.mxu1 %v2372_v0 }
 0x29f   :  { %2149 = vmatpush3.msra.mxu1 %v2584_v19 }
 0x2a0   :  { %2153 = vmatprep.subr.mxu1 %v2372_v0 }
 0x2a9   :  { %v2251_v24 = vpop.eup %2250 }
 0x2aa   :  { %355 = vperm.xlu1 %2245, %v2251_v24   ;;  %v2253_v25 = vpop.eup %2252 }
 0x2ae   :  { %358 = vperm.xlu1 %2245, %v2253_v25  }
 0x325   :  { %v356_v26 = vpop.permute.xlu1 %355 }
 0x326   :  { %v363_v28 = vrot.slane %v356_v26, %v2523_v60 }
 0x329   :  { %v359_v27 = vpop.permute.xlu1 %358 }
 0x32a   :  { %v367_v29 = vrot.slane %v359_v27, %v2523_v60 }
 0x32c   :  { %v368_v30 = vsel %vm328_vm2, %v367_v29, %v363_v28 }
 0x32d   :  { %v370_v32 = vsel %vm331_vm3, %v368_v30, 0.0 }
 0x32e   :  { %371 = vadd.xlane.f32.xlu1 %v370_v32 }
 0x3b7   :  { %v372_v33 = vpop.xlane.xlu1 %371 }
 0x3b8   :  { %2254 = vrcp.f32 %v372_v33 }
 0x3c5   :  { %v2255_v36 = vpop.eup %2254 }
 0x3c6   :  { %v382_v37 = vrot.slane %v2255_v36, %v2490_v23  ;;  %v378_v38 = vrot.slane %v2255_v36, %v2497_v34 }
 0x3c8   :  { %v386_v39 = vmul.f32 %v2253_v25, %v382_v37  ;;  %v385_v41 = vmul.f32 %v2251_v24, %v378_v38  ;;  %v414_v24 = vld [vmem:[%s2946_s0 + $0x4] sm:$0x1] }
 0x3ca   :  { %394 = vperm.xlu1 %2245, %v386_v39   ;;  %389 = vperm.xlu0 %2244, %v385_v41   ;;  %v234_v41 = vpop.f32.mrf.mxu1 }
 0x3ce   :  { %496 = vrot.lane.b32.xlu0 %v2471_v17, %s2378_s4 }
 0x445   :  { %v395_v46 = vpop.permute.xlu1 %394  ;;  %v390_v47 = vpop.permute.xlu0 %389 }
 0x446   :  { %v398_v48 = vmul.f32 %v395_v46, %v2466_v16  ;;  %v397_v49 = vmul.f32 %v390_v47, %v2460_v15  ;;  %v2621_v47 = vld [vmem:[%s2952_s6] ss:$0 sm:$0xff] }
 0x447   :  { %v2324_v46 = vld [vmem:[#allocation2] sm:$0xff] }
 0x448   :  { %v406_v50 = vsel %vm49_vm0, %v398_v48, 0.0  ;;  %v399_v51 = vsel %vm49_vm0, %v397_v49, 0.0 }
 0x449   :  { %v407_v52 = vrot.slane %v406_v50, 4  ;;  %v400_v53 = vrot.slane %v399_v51, 4  ;;  %v2596_v29 = vpop.permute.xlu0 %496 }
 0x44b   :  { %v408_v54 = vadd.f32 %v407_v52, %v406_v50  ;;  %v401_v56 = vadd.f32 %v400_v53, %v399_v51  ;;  %v2379_v50 = vmov 0.5  }
 0x44c   :  { %v2625_v51 = vsel %vm2614_vm7, 1.0, %v2379_v50 }
 0x44d   :  { %v409_v58 = vrot.slane %v408_v54, 2  ;;  %v402_v59 = vrot.slane %v401_v56, 2 }
 0x44f   :  { %v410_v61 = vadd.f32 %v409_v58, %v408_v54  ;;  %v403_v62 = vadd.f32 %v402_v59, %v401_v56 }
 0x451   :  { %v411_v63 = vrot.slane %v410_v61, 1  ;;  %v404_v1 = vrot.slane %v403_v62, 1 }
 0x453   :  { %v412_v4 = vadd.f32 %v411_v63, %v410_v61  ;;  %v405_v7 = vadd.f32 %v404_v1, %v403_v62  ;;  %v162_v61 = vld [vmem:[%s2949_s3] sm:$0x3] }
 0x455   :  { %v417_v9 = vsel %vm328_vm2, %v412_v4, %v405_v7 }
 0x456   :  { %2140 = vmatmul.mubr.msk.f32.vlgmr.msra.gmra.mxu0 %vm49_vm0, %v417_v9 }
 0x457   :  { %644 = vmatpush1.msra.mxu0 %v2434_v3  ;;  %683 = vmatprep.mubr.f32.mxu0 %v2372_v0 }
 0x458   :  { %645 = vmatprep.subr.mxu0 %v2437_v5 }
 0x459   :  { %646 = vmatpush1.msra.mxu0 %v2439_v6 }
 0x45a   :  { %647 = vmatprep.subr.mxu0 %v2442_v8 }
 0x45b   :  { %648 = vmatpush1.msra.mxu0 %v2445_v10 }
 0x45c   :  { %649 = vmatprep.subr.mxu0 %v2448_v11 }
 0x45d   :  { %650 = vmatpush1.msra.mxu0 %v2451_v13 }
 0x45e   :  { %2164 = vmatprep.subr.mxu0 %v2372_v0 }
 0x516   :  { %v486_v25 = vpop.f32.mrf.mxu0 }
 0x517   :  { %v491_v26 = vrot.slane %v486_v25, 1  ;;  %v494_v27 = vadd.f32 %v486_v25, %v413_v21 }
 0x518   :  { %v2141_v28 = vpop.f32.mrf.mxu0 }
 0x519   :  { %v495_v30 = vadd.f32 %v491_v26, %v414_v24  ;;  %v499_v32 = vadd.f32 %v2596_v29, %v494_v27 }
 0x51b   :  { %v500_v33 = vadd.f32 %v2596_v29, %v495_v30  ;;  %v501_v37 = vmax.f32 %v499_v32, 0.0 }
 0x51d   :  { %v502_v36 = vmax.f32 %v500_v33, 0.0 }
 0x51f   :  { %v505_v38 = vrot.slane %v502_v36, 7 }
 0x521   :  { %v506_v39 = vsel %vm328_vm2, %v505_v38, %v501_v37 }
 0x522   :  { %2151 = vmatmul.mubr.msk.f32.vlgmr.msra.gmra.mxu1 %vm49_vm0, %v506_v39 }
 0x523   :  { %2154 = vmatpush3.msra.mxu1 %v2537_v42  ;;  %2161 = vmatprep.mubr.msk.f32.mxu1 %vm2377_vm4, %v2372_v0 }
 0x524   :  { %2155 = vmatprep.subr.mxu1 %v2372_v0 }
 0x525   :  { %2156 = vmatpush3.msra.mxu1 %v2541_v43 }
 0x526   :  { %2157 = vmatprep.subr.mxu1 %v2372_v0 }
 0x527   :  { %2158 = vmatpush3.msra.mxu1 %v2545_v44 }
 0x528   :  { %2159 = vmatprep.subr.mxu1 %v2372_v0 }
 0x529   :  { %2160 = vmatpush3.msra.mxu1 %v2547_v45 }
 0x52a   :  { %1077 = vmatprep.subr.mxu1 %v2432_v2 }
 0x5e2   :  { %v575_v48 = vpop.f32.mrf.mxu1 }
 0x5e3   :  { %v576_v49 = vadd.f32 %v575_v48, %v234_v41 }
 0x5e4   :  { %v2152_v52 = vpop.f32.mrf.mxu1 }
 0x5e5   :  { %v585_v22 = vadd.f32 %v2621_v47, %v576_v49 }
 0x5e7   :  { %v586_v53 = vmul.f32 %v585_v22, %v2625_v51 }
 0x5e9   :  { %2256 = vtanh.f32 %v586_v53 }
 0x5f6   :  { %v2257_v54 = vpop.eup %2256 }
 0x5f7   :  { %v588_v56 = vmul.f32 0.5, %v2257_v54 }
 0x5f9   :  { %v589_v58 = vadd.f32 0.5, %v588_v56 }
 0x5fb   :  { %v592_v59 = vsel %vm2614_vm7, %v2257_v54, %v589_v58 }
 0x5fc   :  { %599 = vrot.lane.b32.xlu0 %v592_v59, %s2378_s4 }
 0x600   :  { %594 = vrot.lane.b32.xlu0 %v162_v61, %s2380_s29 }
 0x66e   :  { %v600_v62 = vpop.permute.xlu0 %599 }
 0x66f   :  { %v602_v63 = vmul.f32 %v600_v62, %v592_v59 }
 0x671   :  { %604 = vrot.lane.b32.xlu1 %v602_v63, %s2380_s29 }
 0x672   :  { %v595_v1 = vpop.permute.xlu0 %594 }
 0x673   :  { %v597_v4 = vmul.f32 %v595_v1, %v592_v59 }
 0x6e3   :  { %v605_v7 = vpop.permute.xlu1 %604 }
 0x6e4   :  { %v2637_v9 = vadd.f32 %v605_v7, %v597_v4 }
 0x6e6   :  { %2258 = vtanh.f32 %v2637_v9 }
 0x6f3   :  { %v2259_v21 = vpop.eup %2258 }
 0x6f4   :  { %610 = vrot.lane.b32.xlu0 %v2259_v21, %s2378_s4 }
 0x766   :  { %v611_v24 = vpop.permute.xlu0 %610 }
 0x767   :  { %v613_v25 = vmul.f32 %v611_v24, %v592_v59 }
 0x769   :  { %615 = vrot.lane.b32.xlu1 %v613_v25, %s2380_s29 }
 0x7db   :  { %v616_v26 = vpop.permute.xlu1 %615 }
 0x7dc   :  { %2058 = vmatmul.mubr.msk.f32.vlgmr.msra.gmra.mxu0 %vm49_vm0, %v616_v26 }
 0x7dd   :  { %2165 = vmatpush3.msra.mxu0 %v2574_v12  ;;  %2172 = vmatprep.mubr.msk.f32.mxu0 %vm2377_vm4, %v2372_v0 }
 0x7de   :  { %2166 = vmatprep.subr.mxu0 %v2372_v0 }
 0x7df   :  { %2167 = vmatpush3.msra.mxu0 %v2576_v14 }
 0x7e0   :  { %2168 = vmatprep.subr.mxu0 %v2372_v0 }
 0x7e1   :  { %2169 = vmatpush3.msra.mxu0 %v2580_v18 }
 0x7e2   :  { %2170 = vmatprep.subr.mxu0 %v2372_v0 }
 0x7e3   :  { %2171 = vmatpush3.msra.mxu0 %v2584_v19 }
 0x7e4   :  { %2175 = vmatprep.subr.mxu0 %v2372_v0 }
 0x89c   :  { %v2653_v27 = vpop.f32.mrf.mxu0 }
 0x89d   :  { %v721_v28 = vrot.slane %v2653_v27, %v2494_v31 }
 0x89f   :  { %v722_v30 = vcombine.high %v721_v28, %v721_v28  ;;  %v729_v32 = vrot.slane %v721_v28, %v2494_v31 }
 0x8a1   :  { %v736_v33 = vrot.slane %v722_v30, %v2494_v31  ;;  %v740_v36 = vrot.slane %v729_v32, %v2497_v34 }
 0x8a3   :  { %v744_v37 = vrot.slane %v736_v33, %v2497_v34  ;;  %v747_v38 = vadd.f32 %v740_v36, %v2504_v40 }
 0x8a5   :  { %v748_v39 = vadd.f32 %v2499_v35, %v744_v37  ;;  %v749_v41 = vadd.f32 %v2471_v17, %v747_v38 }
 0x8a7   :  { %v750_v48 = vadd.f32 %v2471_v17, %v748_v39  ;;  %2260 = vtanh.f32 %v749_v41 }
 0x8a9   :  { %2262 = vtanh.f32 %v750_v48 }
 0x8b4   :  { %v2261_v49 = vpop.eup %2260 }
 0x8b5   :  { %v753_v50 = vmul.f32 %v2261_v49, %v2486_v20 }
 0x8b6   :  { %v2263_v52 = vpop.eup %2262 }
 0x8b7   :  { %v755_v22 = vsel %vm49_vm0, %v753_v50, 0.0  ;;  %v754_v53 = vmul.f32 %v2263_v52, %v2486_v20 }
 0x8b8   :  { %756 = vadd.xlane.f32.xlu0 %v755_v22 }
 0x8b9   :  { %v758_v54 = vsel %vm49_vm0, %v754_v53, 0.0 }
 0x8ba   :  { %759 = vadd.xlane.f32.xlu1 %v758_v54 }
 0x941   :  { %v757_v56 = vpop.xlane.xlu0 %756 }
 0x942   :  { %v761_v58 = vadd.f32 %v757_v56, %v2516_v55 }
 0x943   :  { %v760_v59 = vpop.xlane.xlu1 %759 }
 0x944   :  { %v762_v61 = vadd.f32 %v760_v59, %v2519_v57  ;;  %766 = vperm.xlu0 %2244, %v761_v58  }
 0x946   :  { %769 = vperm.xlu1 %2245, %v762_v61  }
 0x9bf   :  { %v767_v62 = vpop.permute.xlu0 %766 }
 0x9c0   :  { %v774_v1 = vrot.slane %v767_v62, %v2523_v60 }
 0x9c1   :  { %v770_v63 = vpop.permute.xlu1 %769 }
 0x9c2   :  { %v778_v4 = vrot.slane %v770_v63, %v2523_v60 }
 0x9c4   :  { %v779_v7 = vsel %vm328_vm2, %v778_v4, %v774_v1 }
 0x9c5   :  { %v781_v21 = vsel %vm331_vm3, %v779_v7, -inf }
 0x9c6   :  { %782 = vmax.xlane.f32.xlu0 %v781_v21 }
 0xa4f   :  { %v783_v24 = vpop.xlane.xlu0 %782 }
 0xa50   :  { %v788_v25 = vrot.slane %v783_v24, %v2497_v34  ;;  %v792_v26 = vrot.slane %v783_v24, %v2490_v23 }
 0xa52   :  { %v795_v28 = vsub.f32 %v761_v58, %v788_v25  ;;  %v796_v30 = vsub.f32 %v762_v61, %v792_v26 }
 0xa54   :  { %v797_v32 = vmul.f32 1.442695, %v795_v28  ;;  %v799_v33 = vmul.f32 1.442695, %v796_v30 }
 0xa56   :  { %2264 = vpow2.f32 %v797_v32 }
 0xa57   :  { %2266 = vpow2.f32 %v799_v33 }
 0xa63   :  { %v2265_v36 = vpop.eup %2264 }
 0xa64   :  { %804 = vperm.xlu1 %2245, %v2265_v36   ;;  %v2267_v37 = vpop.eup %2266 }
 0xa68   :  { %807 = vperm.xlu1 %2245, %v2267_v37  }
 0xadf   :  { %v805_v38 = vpop.permute.xlu1 %804 }
 0xae0   :  { %v812_v41 = vrot.slane %v805_v38, %v2523_v60 }
 0xae3   :  { %v808_v39 = vpop.permute.xlu1 %807 }
 0xae4   :  { %v816_v48 = vrot.slane %v808_v39, %v2523_v60 }
 0xae6   :  { %v817_v49 = vsel %vm328_vm2, %v816_v48, %v812_v41  ;;  %v862_v41 = vld [vmem:[%s2946_s0 + $0x1] sm:$0x1]  ;;  %v863_v48 = vld [vmem:[%s2946_s0 + $0x5] sm:$0x1] }
 0xae7   :  { %v819_v50 = vsel %vm331_vm3, %v817_v49, 0.0 }
 0xae8   :  { %820 = vadd.xlane.f32.xlu1 %v819_v50 }
 0xb71   :  { %v821_v52 = vpop.xlane.xlu1 %820 }
 0xb72   :  { %2268 = vrcp.f32 %v821_v52 }
 0xb7f   :  { %v2269_v22 = vpop.eup %2268 }
 0xb80   :  { %v831_v53 = vrot.slane %v2269_v22, %v2490_v23  ;;  %v827_v54 = vrot.slane %v2269_v22, %v2497_v34 }
 0xb82   :  { %v835_v56 = vmul.f32 %v2267_v37, %v831_v53  ;;  %v834_v58 = vmul.f32 %v2265_v36, %v827_v54 }
 0xb84   :  { %843 = vperm.xlu1 %2245, %v835_v56   ;;  %838 = vperm.xlu0 %2244, %v834_v58  }
 0xbff   :  { %v844_v59 = vpop.permute.xlu1 %843  ;;  %v839_v61 = vpop.permute.xlu0 %838 }
 0xc00   :  { %v847_v62 = vmul.f32 %v844_v59, %v2466_v16  ;;  %v846_v63 = vmul.f32 %v839_v61, %v2460_v15 }
 0xc02   :  { %v855_v1 = vsel %vm49_vm0, %v847_v62, 0.0  ;;  %v848_v4 = vsel %vm49_vm0, %v846_v63, 0.0  ;;  %v687_v63 = vpop.f32.mrf.mxu0 }
 0xc03   :  { %v856_v7 = vrot.slane %v855_v1, 4  ;;  %v849_v21 = vrot.slane %v848_v4, 4 }
 0xc05   :  { %v857_v24 = vadd.f32 %v856_v7, %v855_v1  ;;  %v850_v25 = vadd.f32 %v849_v21, %v848_v4 }
 0xc07   :  { %v858_v26 = vrot.slane %v857_v24, 2  ;;  %v851_v28 = vrot.slane %v850_v25, 2 }
 0xc09   :  { %v859_v30 = vadd.f32 %v858_v26, %v857_v24  ;;  %v852_v32 = vadd.f32 %v851_v28, %v850_v25 }
 0xc0b   :  { %v860_v33 = vrot.slane %v859_v30, 1  ;;  %v853_v36 = vrot.slane %v852_v32, 1 }
 0xc0d   :  { %v861_v37 = vadd.f32 %v860_v33, %v859_v30  ;;  %v854_v38 = vadd.f32 %v853_v36, %v852_v32 }
 0xc0f   :  { %v866_v39 = vsel %vm328_vm2, %v861_v37, %v854_v38 }
 0xc10   :  { %2162 = vmatmul.mubr.msk.f32.vlgmr.msra.gmra.mxu1 %vm49_vm0, %v866_v39 }
 0xc11   :  { %1078 = vmatpush1.msra.mxu1 %v2434_v3  ;;  %1117 = vmatprep.mubr.f32.mxu1 %v2372_v0 }
 0xc12   :  { %1079 = vmatprep.subr.mxu1 %v2437_v5 }
 0xc13   :  { %1080 = vmatpush1.msra.mxu1 %v2439_v6 }
 0xc14   :  { %1081 = vmatprep.subr.mxu1 %v2442_v8 }
 0xc15   :  { %1082 = vmatpush1.msra.mxu1 %v2445_v10 }
 0xc16   :  { %1083 = vmatprep.subr.mxu1 %v2448_v11 }
 0xc17   :  { %1084 = vmatpush1.msra.mxu1 %v2451_v13 }
 0xc18   :  { %2186 = vmatprep.subr.mxu1 %v2372_v0 }
 0xcd0   :  { %v935_v49 = vpop.f32.mrf.mxu1 }
 0xcd1   :  { %v940_v50 = vrot.slane %v935_v49, 1  ;;  %v943_v52 = vadd.f32 %v935_v49, %v862_v41 }
 0xcd2   :  { %v2163_v22 = vpop.f32.mrf.mxu1 }
 0xcd3   :  { %v944_v53 = vadd.f32 %v940_v50, %v863_v48  ;;  %v945_v54 = vadd.f32 %v943_v52, %v2596_v29 }
 0xcd5   :  { %v946_v56 = vadd.f32 %v944_v53, %v2596_v29  ;;  %v947_v59 = vmax.f32 %v945_v54, 0.0 }
 0xcd7   :  { %v948_v58 = vmax.f32 %v946_v56, 0.0 }
 0xcd9   :  { %v951_v61 = vrot.slane %v948_v58, 7 }
 0xcdb   :  { %v952_v62 = vsel %vm328_vm2, %v951_v61, %v947_v59 }
 0xcdc   :  { %2173 = vmatmul.mubr.msk.f32.vlgmr.msra.gmra.mxu0 %vm49_vm0, %v952_v62 }
 0xcdd   :  { %2176 = vmatpush3.msra.mxu0 %v2537_v42  ;;  %2183 = vmatprep.mubr.msk.f32.mxu0 %vm2377_vm4, %v2372_v0 }
 0xcde   :  { %2177 = vmatprep.subr.mxu0 %v2372_v0 }
 0xcdf   :  { %2178 = vmatpush3.msra.mxu0 %v2541_v43 }
 0xce0   :  { %2179 = vmatprep.subr.mxu0 %v2372_v0 }
 0xce1   :  { %2180 = vmatpush3.msra.mxu0 %v2545_v44 }
 0xce2   :  { %2181 = vmatprep.subr.mxu0 %v2372_v0 }
 0xce3   :  { %2182 = vmatpush3.msra.mxu0 %v2547_v45 }
 0xce4   :  { %1510 = vmatprep.subr.mxu0 %v2432_v2 }
 0xd9c   :  { %v1021_v1 = vpop.f32.mrf.mxu0 }
 0xd9d   :  { %v1022_v4 = vadd.f32 %v1021_v1, %v687_v63 }
 0xd9e   :  { %v2174_v7 = vpop.f32.mrf.mxu0 }
 0xd9f   :  { %v1025_v21 = vadd.f32 %v2621_v47, %v1022_v4 }
 0xda1   :  { %v1026_v24 = vmul.f32 %v1025_v21, %v2625_v51 }
 0xda3   :  { %2270 = vtanh.f32 %v1026_v24 }
 0xdb0   :  { %v2271_v25 = vpop.eup %2270 }
 0xdb1   :  { %v1028_v26 = vmul.f32 0.5, %v2271_v25 }
 0xdb3   :  { %v1029_v28 = vadd.f32 0.5, %v1028_v26 }
 0xdb5   :  { %v1030_v30 = vsel %vm2614_vm7, %v2271_v25, %v1029_v28 }
 0xdb6   :  { %1033 = vrot.lane.b32.xlu0 %v1030_v30, %s2378_s4  ;;  %v1031_v2 = vmul.f32 %v1030_v30, %v2637_v9 }
 0xe28   :  { %v1034_v32 = vpop.permute.xlu0 %1033 }
 0xe29   :  { %v1036_v33 = vmul.f32 %v1034_v32, %v1030_v30 }
 0xe2b   :  { %1038 = vrot.lane.b32.xlu0 %v1036_v33, %s2380_s29 }
 0xe9d   :  { %v1039_v36 = vpop.permute.xlu0 %1038 }
 0xe9e   :  { %v2725_v37 = vadd.f32 %v1039_v36, %v1031_v2 }
 0xea0   :  { %2272 = vtanh.f32 %v2725_v37 }
 0xead   :  { %v2273_v38 = vpop.eup %2272 }
 0xeae   :  { %1044 = vrot.lane.b32.xlu0 %v2273_v38, %s2378_s4 }
 0xf20   :  { %v1045_v39 = vpop.permute.xlu0 %1044 }
 0xf21   :  { %v1047_v41 = vmul.f32 %v1045_v39, %v1030_v30 }
 0xf23   :  { %1049 = vrot.lane.b32.xlu1 %v1047_v41, %s2380_s29 }
 0xf95   :  { %v1050_v48 = vpop.permute.xlu1 %1049 }
 0xf96   :  { %2061 = vmatmul.mubr.msk.f32.vlgmr.msra.gmra.mxu1 %vm49_vm0, %v1050_v48 }
 0xf97   :  { %2187 = vmatpush3.msra.mxu1 %v2574_v12  ;;  %2194 = vmatprep.mubr.msk.f32.mxu1 %vm2377_vm4, %v2372_v0 }
 0xf98   :  { %2188 = vmatprep.subr.mxu1 %v2372_v0 }
 0xf99   :  { %2189 = vmatpush3.msra.mxu1 %v2576_v14 }
 0xf9a   :  { %2190 = vmatprep.subr.mxu1 %v2372_v0 }
 0xf9b   :  { %2191 = vmatpush3.msra.mxu1 %v2580_v18 }
 0xf9c   :  { %2192 = vmatprep.subr.mxu1 %v2372_v0 }
 0xf9d   :  { %2193 = vmatpush3.msra.mxu1 %v2584_v19 }
 0xf9e   :  { %2197 = vmatprep.subr.mxu1 %v2372_v0 }
0x1056   :  { %v2741_v9 = vpop.f32.mrf.mxu1 }
0x1057   :  { %v1154_v49 = vrot.slane %v2741_v9, %v2494_v31 }
0x1059   :  { %v1155_v50 = vcombine.high %v1154_v49, %v1154_v49  ;;  %v1162_v52 = vrot.slane %v1154_v49, %v2494_v31 }
0x105b   :  { %v1169_v22 = vrot.slane %v1155_v50, %v2494_v31  ;;  %v1173_v53 = vrot.slane %v1162_v52, %v2497_v34 }
0x105d   :  { %v1177_v54 = vrot.slane %v1169_v22, %v2497_v34  ;;  %v1180_v56 = vadd.f32 %v1173_v53, %v2504_v40 }
0x105f   :  { %v1181_v58 = vadd.f32 %v2499_v35, %v1177_v54  ;;  %v1182_v59 = vadd.f32 %v2471_v17, %v1180_v56 }
0x1061   :  { %v1183_v61 = vadd.f32 %v2471_v17, %v1181_v58  ;;  %2274 = vtanh.f32 %v1182_v59 }
0x1063   :  { %2276 = vtanh.f32 %v1183_v61 }
0x106e   :  { %v2275_v62 = vpop.eup %2274 }
0x106f   :  { %v1186_v63 = vmul.f32 %v2275_v62, %v2486_v20 }
0x1070   :  { %v2277_v1 = vpop.eup %2276 }
0x1071   :  { %v1188_v4 = vsel %vm49_vm0, %v1186_v63, 0.0  ;;  %v1187_v7 = vmul.f32 %v2277_v1, %v2486_v20 }
0x1072   :  { %1189 = vadd.xlane.f32.xlu0 %v1188_v4 }
0x1073   :  { %v1191_v21 = vsel %vm49_vm0, %v1187_v7, 0.0 }
0x1074   :  { %1192 = vadd.xlane.f32.xlu1 %v1191_v21 }
0x10fb   :  { %v1190_v24 = vpop.xlane.xlu0 %1189 }
0x10fc   :  { %v1194_v25 = vadd.f32 %v1190_v24, %v2516_v55 }
0x10fd   :  { %v1193_v26 = vpop.xlane.xlu1 %1192 }
0x10fe   :  { %v1195_v17 = vadd.f32 %v1193_v26, %v2519_v57  ;;  %1199 = vperm.xlu0 %2244, %v1194_v25  }
0x1100   :  { %1202 = vperm.xlu1 %2245, %v1195_v17  }
0x1179   :  { %v1200_v28 = vpop.permute.xlu0 %1199 }
0x117a   :  { %v1207_v32 = vrot.slane %v1200_v28, %v2523_v60 }
0x117b   :  { %v1203_v30 = vpop.permute.xlu1 %1202 }
0x117c   :  { %v1211_v33 = vrot.slane %v1203_v30, %v2523_v60 }
0x117e   :  { %v1212_v2 = vsel %vm328_vm2, %v1211_v33, %v1207_v32 }
0x117f   :  { %v1214_v36 = vsel %vm331_vm3, %v1212_v2, -inf }
0x1180   :  { %1215 = vmax.xlane.f32.xlu0 %v1214_v36 }
0x1209   :  { %v1216_v38 = vpop.xlane.xlu0 %1215 }
0x120a   :  { %v1221_v39 = vrot.slane %v1216_v38, %v2497_v34  ;;  %v1225_v41 = vrot.slane %v1216_v38, %v2490_v23 }
0x120c   :  { %v1228_v48 = vsub.f32 %v1194_v25, %v1221_v39  ;;  %v1229_v49 = vsub.f32 %v1195_v17, %v1225_v41 }
0x120e   :  { %v1230_v50 = vmul.f32 1.442695, %v1228_v48  ;;  %v1232_v52 = vmul.f32 1.442695, %v1229_v49 }
0x1210   :  { %2278 = vpow2.f32 %v1230_v50 }
0x1211   :  { %2280 = vpow2.f32 %v1232_v52 }
0x121d   :  { %v2279_v22 = vpop.eup %2278 }
0x121e   :  { %1237 = vperm.xlu1 %2245, %v2279_v22   ;;  %v2281_v53 = vpop.eup %2280 }
0x1222   :  { %1240 = vperm.xlu1 %2245, %v2281_v53  }
0x1299   :  { %v1238_v54 = vpop.permute.xlu1 %1237 }
0x129a   :  { %v1245_v58 = vrot.slane %v1238_v54, %v2523_v60 }
0x129d   :  { %v1241_v56 = vpop.permute.xlu1 %1240 }
0x129e   :  { %v1249_v59 = vrot.slane %v1241_v56, %v2523_v60 }
0x12a0   :  { %v1250_v61 = vsel %vm328_vm2, %v1249_v59, %v1245_v58 }
0x12a1   :  { %v1252_v62 = vsel %vm331_vm3, %v1250_v61, 0.0 }
0x12a2   :  { %1253 = vadd.xlane.f32.xlu1 %v1252_v62  ;;  %v1121_v62 = vpop.f32.mrf.mxu1 }
0x132b   :  { %v1254_v63 = vpop.xlane.xlu1 %1253 }
0x132c   :  { %2282 = vrcp.f32 %v1254_v63 }
0x1339   :  { %v2283_v1 = vpop.eup %2282 }
0x133a   :  { %v1264_v4 = vrot.slane %v2283_v1, %v2490_v23  ;;  %v1260_v7 = vrot.slane %v2283_v1, %v2497_v34 }
0x133c   :  { %v1268_v21 = vmul.f32 %v2281_v53, %v1264_v4  ;;  %v1267_v24 = vmul.f32 %v2279_v22, %v1260_v7 }
0x133e   :  { %1276 = vperm.xlu1 %2245, %v1268_v21   ;;  %1271 = vperm.xlu0 %2244, %v1267_v24  }
0x13b9   :  { %v1277_v25 = vpop.permute.xlu1 %1276  ;;  %v1272_v26 = vpop.permute.xlu0 %1271 }
0x13ba   :  { %v1280_v17 = vmul.f32 %v1277_v25, %v2466_v16  ;;  %v1279_v28 = vmul.f32 %v1272_v26, %v2460_v15 }
0x13bc   :  { %v1288_v30 = vsel %vm49_vm0, %v1280_v17, 0.0  ;;  %v1281_v32 = vsel %vm49_vm0, %v1279_v28, 0.0 }
0x13bd   :  { %v1289_v33 = vrot.slane %v1288_v30, 4  ;;  %v1282_v2 = vrot.slane %v1281_v32, 4 }
0x13bf   :  { %v1290_v36 = vadd.f32 %v1289_v33, %v1288_v30  ;;  %v1283_v38 = vadd.f32 %v1282_v2, %v1281_v32 }
0x13c1   :  { %v1291_v39 = vrot.slane %v1290_v36, 2  ;;  %v1284_v41 = vrot.slane %v1283_v38, 2 }
0x13c3   :  { %v1292_v48 = vadd.f32 %v1291_v39, %v1290_v36  ;;  %v1285_v49 = vadd.f32 %v1284_v41, %v1283_v38 }
0x13c5   :  { %v1293_v50 = vrot.slane %v1292_v48, 1  ;;  %v1286_v52 = vrot.slane %v1285_v49, 1 }
0x13c7   :  { %v1294_v22 = vadd.f32 %v1293_v50, %v1292_v48  ;;  %v1287_v53 = vadd.f32 %v1286_v52, %v1285_v49 }
0x13c9   :  { %v1299_v16 = vsel %vm328_vm2, %v1294_v22, %v1287_v53 }
0x13ca   :  { %2184 = vmatmul.mubr.msk.f32.vlgmr.msra.gmra.mxu0 %vm49_vm0, %v1299_v16 }
0x13cb   :  { %1511 = vmatpush1.msra.mxu0 %v2434_v3  ;;  %1550 = vmatprep.mubr.f32.mxu0 %v2372_v0  ;;  %v1295_v3 = vld [vmem:[%s2946_s0 + $0x2] sm:$0x1] }
0x13cc   :  { %1512 = vmatprep.subr.mxu0 %v2437_v5  ;;  %v1296_v5 = vld [vmem:[%s2946_s0 + $0x6] sm:$0x1] }
0x13cd   :  { %1513 = vmatpush1.msra.mxu0 %v2439_v6 }
0x13ce   :  { %1514 = vmatprep.subr.mxu0 %v2442_v8 }
0x13cf   :  { %1515 = vmatpush1.msra.mxu0 %v2445_v10 }
0x13d0   :  { %1516 = vmatprep.subr.mxu0 %v2448_v11 }
0x13d1   :  { %1517 = vmatpush1.msra.mxu0 %v2451_v13 }
0x13d2   :  { %2208 = vmatprep.subr.mxu0 %v2372_v0 }
0x148a   :  { %v1368_v15 = vpop.f32.mrf.mxu0 }
0x148b   :  { %v1373_v6 = vrot.slane %v1368_v15, 1  ;;  %v1376_v54 = vadd.f32 %v1368_v15, %v1295_v3 }
0x148c   :  { %v2185_v8 = vpop.f32.mrf.mxu0 }
0x148d   :  { %v1377_v56 = vadd.f32 %v1373_v6, %v1296_v5  ;;  %v1378_v10 = vadd.f32 %v1376_v54, %v2596_v29 }
0x148f   :  { %v1379_v11 = vadd.f32 %v1377_v56, %v2596_v29  ;;  %v1380_v58 = vmax.f32 %v1378_v10, 0.0 }
0x1491   :  { %v1381_v13 = vmax.f32 %v1379_v11, 0.0 }
0x1493   :  { %v1384_v59 = vrot.slane %v1381_v13, 7 }
0x1495   :  { %v1385_v61 = vsel %vm328_vm2, %v1384_v59, %v1380_v58 }
0x1496   :  { %2195 = vmatmul.mubr.msk.f32.vlgmr.msra.gmra.mxu1 %vm49_vm0, %v1385_v61 }
0x1497   :  { %2198 = vmatpush3.msra.mxu1 %v2537_v42  ;;  %2205 = vmatprep.mubr.msk.f32.mxu1 %vm2377_vm4, %v2372_v0 }
0x1498   :  { %2199 = vmatprep.subr.mxu1 %v2372_v0 }
0x1499   :  { %2200 = vmatpush3.msra.mxu1 %v2541_v43 }
0x149a   :  { %2201 = vmatprep.subr.mxu1 %v2372_v0 }
0x149b   :  { %2202 = vmatpush3.msra.mxu1 %v2545_v44 }
0x149c   :  { %2203 = vmatprep.subr.mxu1 %v2372_v0 }
0x149d   :  { %2204 = vmatpush3.msra.mxu1 %v2547_v45 }
0x149e   :  { %2219 = vmatprep.subr.mxu1 %v2372_v0 }
0x1556   :  { %v1454_v63 = vpop.f32.mrf.mxu1 }
0x1557   :  { %v1455_v42 = vadd.f32 %v1454_v63, %v1121_v62 }
0x1558   :  { %v2196_v1 = vpop.f32.mrf.mxu1 }
0x1559   :  { %v1458_v4 = vadd.f32 %v2621_v47, %v1455_v42 }
0x155b   :  { %v1459_v7 = vmul.f32 %v1458_v4, %v2625_v51 }
0x155d   :  { %2284 = vtanh.f32 %v1459_v7 }
0x156a   :  { %v2285_v43 = vpop.eup %2284 }
0x156b   :  { %v1461_v21 = vmul.f32 0.5, %v2285_v43 }
0x156d   :  { %v1462_v24 = vadd.f32 0.5, %v1461_v21 }
0x156f   :  { %v1463_v44 = vsel %vm2614_vm7, %v2285_v43, %v1462_v24 }
0x1570   :  { %1466 = vrot.lane.b32.xlu0 %v1463_v44, %s2378_s4  ;;  %v1464_v26 = vmul.f32 %v1463_v44, %v2725_v37 }
0x15e2   :  { %v1467_v45 = vpop.permute.xlu0 %1466 }
0x15e3   :  { %v1469_v25 = vmul.f32 %v1467_v45, %v1463_v44 }
0x15e5   :  { %1471 = vrot.lane.b32.xlu0 %v1469_v25, %s2380_s29 }
0x1657   :  { %v1472_v17 = vpop.permute.xlu0 %1471 }
0x1658   :  { %v2813_v28 = vadd.f32 %v1472_v17, %v1464_v26 }
0x165a   :  { %2286 = vtanh.f32 %v2813_v28 }
0x1667   :  { %v2287_v30 = vpop.eup %2286 }
0x1668   :  { %1477 = vrot.lane.b32.xlu0 %v2287_v30, %s2378_s4  ;;  %v2319_v30 = vld [vmem:[#allocation2 + $0x78] sm:$0xff] }
0x16da   :  { %v1478_v32 = vpop.permute.xlu0 %1477 }
0x16db   :  { %v1480_v33 = vmul.f32 %v1478_v32, %v1463_v44 }
0x16dd   :  { %1482 = vrot.lane.b32.xlu1 %v1480_v33, %s2380_s29 }
0x174f   :  { %v1483_v2 = vpop.permute.xlu1 %1482 }
0x1750   :  { %2064 = vmatmul.mubr.msk.f32.vlgmr.msra.gmra.mxu0 %vm49_vm0, %v1483_v2  ;;  %v2321_v2 = vld [vmem:[%s2947_s1 + $0x8] sm:$0xff] }
0x1751   :  { %2209 = vmatpush3.msra.mxu0 %v2574_v12  ;;  %2216 = vmatprep.mubr.msk.f32.mxu0 %vm2377_vm4, %v2372_v0 }
0x1752   :  { %2210 = vmatprep.subr.mxu0 %v2372_v0 }
0x1753   :  { %2211 = vmatpush3.msra.mxu0 %v2576_v14 }
0x1754   :  { %2212 = vmatprep.subr.mxu0 %v2372_v0 }
0x1755   :  { %2213 = vmatpush3.msra.mxu0 %v2580_v18 }
0x1756   :  { %2214 = vmatprep.subr.mxu0 %v2372_v0 }
0x1757   :  { %2215 = vmatpush3.msra.mxu0 %v2584_v19  ;;  %v2841_v19 = vld [vmem:[%s2952_s6 + $0x1] ss:$0 sm:$0xff] }
0x1810   :  { %v2828_v37 = vpop.f32.mrf.mxu0 }
0x1811   :  { %v1587_v12 = vrot.slane %v2828_v37, %v2494_v31 }
0x1813   :  { %v1588_v36 = vcombine.high %v1587_v12, %v1587_v12  ;;  %v1595_v38 = vrot.slane %v1587_v12, %v2494_v31 }
0x1815   :  { %v1602_v39 = vrot.slane %v1588_v36, %v2494_v31  ;;  %v1606_v14 = vrot.slane %v1595_v38, %v2497_v34 }
0x1817   :  { %v1610_v41 = vrot.slane %v1602_v39, %v2497_v34  ;;  %v1613_v18 = vadd.f32 %v1606_v14, %v2504_v40 }
0x1819   :  { %v1614_v48 = vadd.f32 %v2499_v35, %v1610_v41  ;;  %v1615_v49 = vadd.f32 %v2841_v19, %v1613_v18 }
0x181b   :  { %v1616_v50 = vadd.f32 %v2841_v19, %v1614_v48  ;;  %2288 = vtanh.f32 %v1615_v49 }
0x181d   :  { %2290 = vtanh.f32 %v1616_v50 }
0x1828   :  { %v2289_v31 = vpop.eup %2288 }
0x1829   :  { %v1619_v52 = vmul.f32 %v2289_v31, %v2486_v20 }
0x182a   :  { %v2291_v22 = vpop.eup %2290 }
0x182b   :  { %v1621_v53 = vsel %vm49_vm0, %v1619_v52, 0.0  ;;  %v1620_v40 = vmul.f32 %v2291_v22, %v2486_v20 }
0x182c   :  { %1622 = vadd.xlane.f32.xlu0 %v1621_v53 }
0x182d   :  { %v1624_v35 = vsel %vm49_vm0, %v1620_v40, 0.0 }
0x182e   :  { %1625 = vadd.xlane.f32.xlu1 %v1624_v35 }
0x18b5   :  { %v1623_v16 = vpop.xlane.xlu0 %1622 }
0x18b6   :  { %v1627_v3 = vadd.f32 %v1623_v16, %v2516_v55  ;;  %v1728_v16 = vld [vmem:[%s2946_s0 + $0x3] sm:$0x1] }
0x18b7   :  { %v1626_v5 = vpop.xlane.xlu1 %1625 }
0x18b8   :  { %v1628_v15 = vadd.f32 %v1626_v5, %v2519_v57  ;;  %1632 = vperm.xlu0 %2244, %v1627_v3  }
0x18ba   :  { %1635 = vperm.xlu1 %2245, %v1628_v15  }
0x1933   :  { %v1633_v6 = vpop.permute.xlu0 %1632 }
0x1934   :  { %v1640_v8 = vrot.slane %v1633_v6, %v2523_v60 }
0x1935   :  { %v1636_v54 = vpop.permute.xlu1 %1635 }
0x1936   :  { %v1644_v56 = vrot.slane %v1636_v54, %v2523_v60 }
0x1938   :  { %v1645_v20 = vsel %vm328_vm2, %v1644_v56, %v1640_v8 }
0x1939   :  { %v1647_v10 = vsel %vm331_vm3, %v1645_v20, -inf }
0x193a   :  { %1648 = vmax.xlane.f32.xlu0 %v1647_v10 }
0x19c3   :  { %v1649_v11 = vpop.xlane.xlu0 %1648 }
0x19c4   :  { %v1654_v13 = vrot.slane %v1649_v11, %v2497_v34  ;;  %v1658_v55 = vrot.slane %v1649_v11, %v2490_v23 }
0x19c6   :  { %v1661_v58 = vsub.f32 %v1627_v3, %v1654_v13  ;;  %v1662_v57 = vsub.f32 %v1628_v15, %v1658_v55  ;;  %v1729_v3 = vld [vmem:[%s2946_s0 + $0x7] sm:$0x1] }
0x19c8   :  { %v1663_v59 = vmul.f32 1.442695, %v1661_v58  ;;  %v1665_v61 = vmul.f32 1.442695, %v1662_v57  ;;  %v1554_v58 = vpop.f32.mrf.mxu0 }
0x19ca   :  { %2292 = vpow2.f32 %v1663_v59 }
0x19cb   :  { %2294 = vpow2.f32 %v1665_v61 }
0x19d7   :  { %v2293_v62 = vpop.eup %2292 }
0x19d8   :  { %1670 = vperm.xlu1 %2245, %v2293_v62   ;;  %v2295_v63 = vpop.eup %2294 }
0x19dc   :  { %1673 = vperm.xlu1 %2245, %v2295_v63  }
0x1a53   :  { %v1671_v42 = vpop.permute.xlu1 %1670 }
0x1a54   :  { %v1678_v4 = vrot.slane %v1671_v42, %v2523_v60 }
0x1a57   :  { %v1674_v1 = vpop.permute.xlu1 %1673 }
0x1a58   :  { %v1682_v7 = vrot.slane %v1674_v1, %v2523_v60  ;;  %v2320_v60 = vld [vmem:[#allocation2 + $0x28] sm:$0xff] }
0x1a5a   :  { %v1683_v43 = vsel %vm328_vm2, %v1682_v7, %v1678_v4 }
0x1a5b   :  { %v1685_v21 = vsel %vm331_vm3, %v1683_v43, 0.0 }
0x1a5c   :  { %1686 = vadd.xlane.f32.xlu1 %v1685_v21 }
0x1ae5   :  { %v1687_v24 = vpop.xlane.xlu1 %1686 }
0x1ae6   :  { %2296 = vrcp.f32 %v1687_v24 }
0x1af3   :  { %v2297_v44 = vpop.eup %2296 }
0x1af4   :  { %v1697_v45 = vrot.slane %v2297_v44, %v2490_v23  ;;  %v1693_v25 = vrot.slane %v2297_v44, %v2497_v34  ;;  %v2322_v23 = vld [vmem:[%s2947_s1] sm:$0xff] }
0x1af6   :  { %v1701_v26 = vmul.f32 %v2295_v63, %v1697_v45  ;;  %v1700_v17 = vmul.f32 %v2293_v62, %v1693_v25  ;;  %v690_v25 = vadd.f32 %v2653_v27, %v2596_v29 }
0x1af8   :  { %1709 = vperm.xlu1 %2245, %v1701_v26   ;;  %1704 = vperm.xlu0 %2244, %v1700_v17   ;;  %v692_v26 = vsel %vm691_vm8, %v690_v25, -inf }
0x1afc   :  { %1927 = vrot.lane.b32.xlu1 %v2319_v30, %s2374_s2 }
0x1b00   :  { %1923 = vrot.lane.b32.xlu1 %v2320_v60, %s2374_s2 }
0x1b73   :  { %v1710_v32 = vpop.permute.xlu1 %1709  ;;  %v1705_v33 = vpop.permute.xlu0 %1704 }
0x1b74   :  { %v1713_v12 = vmul.f32 %v2321_v2, %v1710_v32  ;;  %v1712_v34 = vmul.f32 %v2322_v23, %v1705_v33 }
0x1b76   :  { %v1721_v36 = vsel %vm49_vm0, %v1713_v12, 0.0  ;;  %v1714_v38 = vsel %vm49_vm0, %v1712_v34, 0.0 }
0x1b77   :  { %v1722_v39 = vrot.slane %v1721_v36, 4  ;;  %v1715_v14 = vrot.slane %v1714_v38, 4  ;;  %v1928_v30 = vpop.permute.xlu1 %1927 }
0x1b79   :  { %v1723_v41 = vadd.f32 %v1722_v39, %v1721_v36  ;;  %v1716_v18 = vadd.f32 %v1715_v14, %v1714_v38 }
0x1b7b   :  { %v1724_v48 = vrot.slane %v1723_v41, 2  ;;  %v1717_v49 = vrot.slane %v1716_v18, 2  ;;  %v1924_v33 = vpop.permute.xlu1 %1923 }
0x1b7d   :  { %v1725_v50 = vadd.f32 %v1724_v48, %v1723_v41  ;;  %v1718_v31 = vadd.f32 %v1717_v49, %v1716_v18 }
0x1b7f   :  { %v1726_v52 = vrot.slane %v1725_v50, 1  ;;  %v1719_v22 = vrot.slane %v1718_v31, 1 }
0x1b81   :  { %v1727_v53 = vadd.f32 %v1726_v52, %v1725_v50  ;;  %v1720_v40 = vadd.f32 %v1719_v22, %v1718_v31 }
0x1b83   :  { %v1732_v35 = vsel %vm328_vm2, %v1727_v53, %v1720_v40 }
0x1b84   :  { %2206 = vmatmul.mubr.msk.f32.vlgmr.msra.gmra.mxu1 %vm49_vm0, %v1732_v35 }
0x1b85   :  { %2227 = vmatprep.mubr.msk.f32.mxu1 %vm2377_vm4, %v2372_v0  ;;  %2220 = vmatpush3.msra.mxu1 %v1928_v30 }
0x1b86   :  { %2221 = vmatprep.subr.mxu1 %v2372_v0 }
0x1c44   :  { %v1801_v5 = vpop.f32.mrf.mxu1 }
0x1c45   :  { %v1806_v15 = vrot.slane %v1801_v5, 1  ;;  %v1809_v6 = vadd.f32 %v1801_v5, %v1728_v16 }
0x1c46   :  { %v2207_v54 = vpop.f32.mrf.mxu1 }
0x1c47   :  { %v1810_v8 = vadd.f32 %v1806_v15, %v1729_v3  ;;  %v1811_v56 = vadd.f32 %v1809_v6, %v2596_v29 }
0x1c49   :  { %v1812_v20 = vadd.f32 %v1810_v8, %v2596_v29  ;;  %v1813_v11 = vmax.f32 %v1811_v56, 0.0 }
0x1c4b   :  { %v1814_v10 = vmax.f32 %v1812_v20, 0.0 }
0x1c4d   :  { %v1817_v13 = vrot.slane %v1814_v10, 7 }
0x1c4f   :  { %v1818_v55 = vsel %vm328_vm2, %v1817_v13, %v1813_v11 }
0x1c50   :  { %2217 = vmatmul.mubr.msk.f32.vlgmr.msra.gmra.mxu0 %vm49_vm0, %v1818_v55 }
0x1d10   :  { %v1887_v57 = vpop.f32.mrf.mxu0 }
0x1d11   :  { %v1888_v59 = vadd.f32 %v1887_v57, %v1554_v58 }
0x1d12   :  { %v2218_v61 = vpop.f32.mrf.mxu0 }
0x1d13   :  { %v1891_v62 = vadd.f32 %v2621_v47, %v1888_v59 }
0x1d15   :  { %v1892_v63 = vmul.f32 %v1891_v62, %v2625_v51  ;;  %v2323_v51 = vld [vmem:[#allocation2 + $0x50] sm:$0xff] }
0x1d17   :  { %2298 = vtanh.f32 %v1892_v63 }
0x1d24   :  { %v2299_v42 = vpop.eup %2298 }
0x1d25   :  { %v1894_v1 = vmul.f32 0.5, %v2299_v42 }
0x1d27   :  { %v1895_v4 = vadd.f32 0.5, %v1894_v1 }
0x1d29   :  { %v1896_v7 = vsel %vm2614_vm7, %v2299_v42, %v1895_v4 }
0x1d2a   :  { %1899 = vrot.lane.b32.xlu0 %v1896_v7, %s2378_s4  ;;  %v1897_v24 = vmul.f32 %v1896_v7, %v2813_v28  ;;  %v1557_v28 = vadd.f32 %v2828_v37, %v2596_v29 }
0x1d2c   :  { %v1558_v17 = vsel %vm691_vm8, %v1557_v28, -inf }
0x1d9c   :  { %v1900_v43 = vpop.permute.xlu0 %1899 }
0x1d9d   :  { %v1902_v21 = vmul.f32 %v1900_v43, %v1896_v7 }
0x1d9f   :  { %1904 = vrot.lane.b32.xlu0 %v1902_v21, %s2380_s29 }
0x1e11   :  { %v1905_v44 = vpop.permute.xlu0 %1904 }
0x1e12   :  { %v2894_v45 = vadd.f32 %v1905_v44, %v1897_v24 }
0x1e14   :  { %2300 = vtanh.f32 %v2894_v45 }
0x1e21   :  { %v2301_v47 = vpop.eup %2300 }
0x1e22   :  { %1910 = vrot.lane.b32.xlu0 %v2301_v47, %s2378_s4 }
0x1e26   :  { %1925 = vrot.lane.b32.xlu0 %v2323_v51, %s2374_s2 }
0x1e2a   :  { %1921 = vrot.lane.b32.xlu0 %v2324_v46, %s2374_s2 }
0x1e49   :  { %693 = vmax.xlane.f32.xlu0 %v692_v26 }
0x1e4d   :  { %1559 = vmax.xlane.f32.xlu0 %v1558_v17 }
0x1e63   :  { %1933 = vrot.lane.b32.xlu0 %v2841_v19, %s2380_s29  ;;  %v1124_v19 = vadd.f32 %v2741_v9, %v2596_v29 }
0x1e65   :  { %v1125_v2 = vsel %vm691_vm8, %v1124_v19, -inf }
0x1e94   :  { %v1911_v60 = vpop.permute.xlu0 %1910 }
0x1e95   :  { %v1913_v32 = vmul.f32 %v1911_v60, %v1896_v7 }
0x1e97   :  { %1915 = vrot.lane.b32.xlu1 %v1913_v32, %s2380_s29 }
0x1e98   :  { %v1926_v27 = vpop.permute.xlu0 %1925 }
0x1e99   :  { %2222 = vmatpush3.msra.mxu1 %v1926_v27 }
0x1e9a   :  { %2223 = vmatprep.subr.mxu1 %v2372_v0 }
0x1e9b   :  { %2224 = vmatpush3.msra.mxu1 %v1924_v33 }
0x1e9c   :  { %v1922_v37 = vpop.permute.xlu0 %1921  ;;  %2225 = vmatprep.subr.mxu1 %v2372_v0 }
0x1e9d   :  { %2226 = vmatpush3.msra.mxu1 %v1922_v37 }
0x1ebb   :  { %1126 = vmax.xlane.f32.xlu1 %v1125_v2 }
0x1ed2   :  { %v694_v12 = vpop.xlane.xlu0 %693 }
0x1ed3   :  { %v695_v23 = vsub.f32 %v690_v25, %v694_v12 }
0x1ed5   :  { %v696_v34 = vmul.f32 1.442695, %v695_v23 }
0x1ed6   :  { %v1560_v36 = vpop.xlane.xlu0 %1559 }
0x1ed7   :  { %2302 = vpow2.f32 %v696_v34  ;;  %v1561_v38 = vsub.f32 %v1557_v28, %v1560_v36 }
0x1ed9   :  { %v1562_v39 = vmul.f32 1.442695, %v1561_v38 }
0x1eda   :  { %v1934_v31 = vpop.permute.xlu0 %1933 }
0x1edb   :  { %2304 = vpow2.f32 %v1562_v39 }
0x1ee4   :  { %v2303_v14 = vpop.eup %2302 }
0x1ee5   :  { %699 = vrot.lane.b32.xlu1 %v2303_v14, %s2374_s2 }
0x1ee8   :  { %v2305_v41 = vpop.eup %2304 }
0x1ee9   :  { %1565 = vrot.lane.b32.xlu0 %v2305_v41, %s2374_s2 }
0x1f09   :  { %v1916_v0 = vpop.permute.xlu1 %1915 }
0x1f0a   :  { %2023 = vst.msk [vmem:[%s2954_s8] sm:$0x3] %vm702_vm9, %v1916_v0  ;;  %2228 = vmatmul.mubr.msk.f32.vlgmr.msra.gmra.mxu1 %vm49_vm0, %v1916_v0 }
0x1f44   :  { %v1127_v29 = vpop.xlane.xlu1 %1126 }
0x1f45   :  { %v1128_v9 = vsub.f32 %v1124_v19, %v1127_v29 }
0x1f47   :  { %v1129_v18 = vmul.f32 1.442695, %v1128_v9 }
0x1f49   :  { %2306 = vpow2.f32 %v1129_v18 }
0x1f56   :  { %v2307_v48 = vpop.eup %2306 }
0x1f57   :  { %1132 = vrot.lane.b32.xlu1 %v2307_v48, %s2374_s2  ;;  %v700_v49 = vpop.permute.xlu1 %699 }
0x1f58   :  { %v703_v50 = vsel %vm702_vm9, %v700_v49, 0.0 }
0x1f59   :  { %704 = vadd.xlane.f32.xlu0 %v703_v50 }
0x1f5b   :  { %v1566_v3 = vpop.permute.xlu0 %1565 }
0x1f5c   :  { %v1568_v5 = vsel %vm702_vm9, %v1566_v3, 0.0 }
0x1fc9   :  { %v1133_v52 = vpop.permute.xlu1 %1132 }
0x1fca   :  { %v2004_v22 = vpop.f32.mrf.mxu1  ;;  %v1135_v53 = vsel %vm702_vm9, %v1133_v52, 0.0 }
0x1fcb   :  { %v2005_v40 = vadd.f32 %v2004_v22, %v1934_v31  ;;  %1136 = vadd.xlane.f32.xlu0 %v1135_v53 }
0x1fcc   :  { %v2229_v35 = vpop.f32.mrf.mxu1 }
0x1fcd   :  { %v2008_v16 = vsel %vm702_vm9, %v2005_v40, -inf }
0x1fce   :  { %2009 = vmax.xlane.f32.xlu1 %v2008_v16 }
0x1fd2   :  { %1569 = vadd.xlane.f32.xlu1 %v1568_v5 }
0x1fe2   :  { %v705_v15 = vpop.xlane.xlu0 %704 }
0x1fe3   :  { %2308 = vlog2.f32 %v705_v15 }
0x1ff0   :  { %v2309_v6 = vpop.eup %2308 }
0x1ff1   :  { %v707_v54 = vmul.f32 0.6931472, %v2309_v6 }
0x1ff3   :  { %v708_v8 = vsub.f32 %v695_v23, %v707_v54 }
0x1ff5   :  { %710 = vrot.lane.b32.xlu0 %v708_v8, %s2374_s2 }
0x2054   :  { %v1137_v56 = vpop.xlane.xlu0 %1136 }
0x2055   :  { %2310 = vlog2.f32 %v1137_v56 }
0x2057   :  { %v2010_v20 = vpop.xlane.xlu1 %2009 }
0x2058   :  { %v2011_v10 = vsub.f32 %v2005_v40, %v2010_v20 }
0x205a   :  { %v2012_v11 = vmul.f32 1.442695, %v2011_v10 }
0x205b   :  { %v1570_v13 = vpop.xlane.xlu1 %1569 }
0x205c   :  { %2312 = vpow2.f32 %v2012_v11 }
0x205d   :  { %2314 = vlog2.f32 %v1570_v13 }
0x2062   :  { %v2311_v55 = vpop.eup %2310 }
0x2063   :  { %v1139_v58 = vmul.f32 0.6931472, %v2311_v55 }
0x2065   :  { %v1140_v57 = vsub.f32 %v1128_v9, %v1139_v58 }
0x2067   :  { %v711_v59 = vpop.permute.xlu0 %710  ;;  %1142 = vrot.lane.b32.xlu1 %v1140_v57, %s2374_s2 }
0x2068   :  { %713 = vst.msk [vmem:[#allocation5] sm:$0x3] %vm702_vm9, %v711_v59 }
0x2069   :  { %v2313_v61 = vpop.eup %2312 }
0x206a   :  { %v2315_v62 = vpop.eup %2314  ;;  %v2014_v63 = vsel %vm702_vm9, %v2313_v61, 0.0 }
0x206b   :  { %v1572_v42 = vmul.f32 0.6931472, %v2315_v62  ;;  %2015 = vadd.xlane.f32.xlu0 %v2014_v63 }
0x206d   :  { %v1573_v1 = vsub.f32 %v1561_v38, %v1572_v42 }
0x206f   :  { %1575 = vrot.lane.b32.xlu1 %v1573_v1, %s2374_s2 }
0x2073   :  { %2025 = vrot.lane.b32.xlu1 %v2894_v45, %s2374_s2  ;;  %s2345_s2 = scalar_lea.vmem %s2036_s25, 128 }
0x2074   :  { %p2346_p5 = scmp.ne.s32.totalorder %s2036_s25, %s2345_s2  ;;  %p2351_p7 = scmp.lt.s32.totalorder %s2345_s2, %s2345_s2 }
0x2076   :  { %p2352_p8 = por %p2351_p7, %p2350_p6 }
0x2078   :  { %p2353_p9 = pnand %p2352_p8, %p2346_p5 }
0x20d9   :  { %v1143_v4 = vpop.permute.xlu1 %1142 }
0x20da   :  { %1146 = vst.msk [vmem:[#allocation5 + $0x2] sm:$0x3] %vm702_vm9, %v1143_v4 }
0x20e1   :  { %v1576_v7 = vpop.permute.xlu1 %1575 }
0x20e2   :  { %1579 = vst.msk [vmem:[#allocation5 + $0x4] sm:$0x3] %vm702_vm9, %v1576_v7 }
0x20e5   :  { %v2026_v43 = vpop.permute.xlu1 %2025 }
0x20e6   :  { %2068 = vst.msk [vmem:[%s2954_s8 + $0x2] sm:$0x3] %vm702_vm9, %v2026_v43 }
0x20f4   :  { %v2016_v21 = vpop.xlane.xlu0 %2015 }
0x20f5   :  { %2316 = vlog2.f32 %v2016_v21 }
0x2102   :  { %v2317_v24 = vpop.eup %2316 }
0x2103   :  { %v2018_v44 = vmul.f32 0.6931472, %v2317_v24 }
0x2105   :  { %v2019_v47 = vsub.f32 %v2011_v10, %v2018_v44 }
0x2107   :  { %2021 = vst.msk [vmem:[#allocation5 + $0x6] sm:$0x3] %vm702_vm9, %v2019_v47 }
0x2108   :  { %2356 = shalt.err (!%p2353_p9)
}
0x2109   :  { %s2382_s26 = smov 2  }
0x210a   :  { %2041 = dma.vmem_to_hbm [thread:$0]  %s2036_s25, 128, %s2953_s7, [#allocation4], %s2380_s29, %s2380_s29, %s2382_s26  }
0x210b   :  { %2367 = dma.done.wait [#allocation4], 128  }
0x210c   :  { %2368 = vsyncadd [#allocation4], 4294967168 }
0x210d   :  { %2049 = vsyncpa [#allocation3], 1 }
0x210e   :  { %2050 = vsyncpa [#allocation4], 1 }

</bundles_post_ra>
